<compile_context>
chip_gen: v7x
topology: tpu7x:2x2x1
jax: 0.10.0
libtpu: 0.0.40
codegen_flags: <defaults>
</compile_context>

<pallas_src>
import jax
import jax.numpy as jnp
from jax import lax
from jax.experimental import pallas as pl
from jax.experimental.pallas import tpu as pltpu

VMEM_SPEC = pl.BlockSpec(memory_space=pltpu.MemorySpace.VMEM)

# ----------------------------- configuration --------------------------------
ALIGNED = False          # args.need_data_aligned
BATCH = 2
SEQ_TEXT = 8
VOCAB = 32
TEXT_EMB = 32
TEXT_OUT = 32
SEQ_AV = 8
AUDIO_IN, A_HIDDEN, AUDIO_OUT = 16, 16, 16
VIDEO_IN, V_HIDDEN, VIDEO_OUT = 16, 16, 16
NUM_CLASSES = 3
NUM_VIEWS = 3
BN_EPS = 1e-5

# lane-alignment constants for the fused kernel
HID_PAD = 64                       # per-modality hidden slab (audio | video)
HID_W = 2 * HID_PAD                # 128: combined hidden width (one vreg of lanes)
GATE_W = 4 * HID_W                 # 512: [i | f | g | o], each slab vreg-aligned
DW = AUDIO_IN + VIDEO_IN           # 32 : combined AV input width
FEAT_W = TEXT_OUT + AUDIO_OUT + VIDEO_OUT   # 64: [text_feat | audio_out | video_out]
EV_SLAB = 128                      # per-view evidence slab width (lane-dense output)
EV_W = NUM_VIEWS * EV_SLAB         # 384
U_W = HID_W + VOCAB                # 160: [h | counts] merged feature-matmul input
W_POST_ROWS = U_W + FEAT_W         # 224: rows of the packed post-LSTM weight slab


def _softplus(y):
    # matches torch.nn.Softplus(beta=1, threshold=20)
    return jnp.where(y > 20.0, y, jnp.log1p(jnp.exp(jnp.minimum(y, 20.0))))


# ----------------------------- fused kernel ----------------------------------
# TODO(synk): the pretrained BertTextEncoder has no clean Pallas equivalent;
#             it is replaced by embedding + masked mean-pool + linear + tanh.
def self_mm_fused_kernel(text_ref, x_ref, wlstm_ref, wpost_ref, bias_ref, out_ref):
    f32 = jnp.float32
    bf16 = jnp.bfloat16
    _, B, L = text_ref.shape
    TB, dw = x_ref.shape
    T = TB // B
    HW = HID_W

    # ---- packed biases / folded BN scale-shift: one (8, 512) slab -----------
    bias = bias_ref[...]
    gate_b = bias[0:1, :]                         # (1, GATE_W)  b_ih + b_hh
    feat_b = bias[1:2, 0:FEAT_W]                  # (1, 64)      [tb | blin]
    bev = bias[2:3, 0:EV_W]                       # (1, 384)
    bn_sc = bias[3:4, 0:EV_W]
    bn_sh = bias[4:5, 0:EV_W]

    # ---- text branch: one-hot counts + masked mean-pool (folded linear) -----
    tp = text_ref[...]                            # (3, B, L) f32
    ids = tp[0].astype(jnp.int32)                 # (B, L)
    mask = tp[1]                                  # (B, L)
    lens = tp[2]                                  # (B, L): lane0=a_len, lane1=v_len
    vocab_iota = lax.broadcasted_iota(jnp.int32, (B, L, VOCAB), 2)
    onehot_m = jnp.where(ids[:, :, None] == vocab_iota, mask[:, :, None], 0.0)
    counts = jnp.sum(onehot_m, axis=1)            # (B, VOCAB)
    cnt = jnp.maximum(jnp.sum(mask, axis=1, keepdims=True), 1.0)
    counts_scaled = counts / cnt                  # exact divide (commutes with W)

    # ---- stacked audio+video LSTM: one block-diagonal recurrence -------------
    wl = wlstm_ref[...]                           # (DW+HW, GATE_W) bf16
    wih = wl[0:dw, :]
    whh = wl[dw:dw + HW, :]
    x = x_ref[...]                                # (T*B, DW) bf16, TIME-MAJOR
    # hoisted input projection (incl. bias): one MXU call for all T steps
    gx = jnp.dot(x, wih, preferred_element_type=f32) + gate_b      # (T*B, GATE_W)

    # per-lane sequence length: audio slab uses a_len, video slab uses v_len
    a_len = lens[:, 0:1]
    v_len = lens[:, 1:2]
    lane = lax.broadcasted_iota(jnp.int32, (B, HW), 1)
    len_bcast = jnp.where(lane < HID_PAD, a_len, v_len)            # (B, HW)

    h = jnp.zeros((B, HW), f32)
    c = jnp.zeros((B, HW), f32)
    for t in range(T):                            # T static: full unroll
        # leading-axis (sublane) slice of the time-major gate projection
        gates = gx[t * B:(t + 1) * B, :] + jnp.dot(
            h.astype(bf16), whh, preferred_element_type=f32)
        i = jax.nn.sigmoid(gates[:, 0 * HW:1 * HW])                # vreg-aligned slabs
        f = jax.nn.sigmoid(gates[:, 1 * HW:2 * HW])
        g = jnp.tanh(gates[:, 2 * HW:3 * HW])
        o = jax.nn.sigmoid(gates[:, 3 * HW:4 * HW])
        c_new = f * c + i * g
        h_new = o * jnp.tanh(c_new)
        # pack_padded_sequence semantics: freeze h/c past each sequence length
        active = float(t) < len_bcast
        h = jnp.where(active, h_new, h)
        c = jnp.where(active, c_new, c)

    # ---- merged text-linear + av-linear: one matmul (vreg-aligned concat) ---
    # u = [h (lanes 0:128) | counts (lanes 128:160)] -> no intra-vreg shifting
    wp = wpost_ref[...]                                            # (224, 384) bf16
    u = jnp.concatenate([h, counts_scaled], axis=1).astype(bf16)   # (B, 160)
    w1 = wp[0:U_W, 0:FEAT_W]                                       # (160, 64)
    pre = jnp.dot(u, w1, preferred_element_type=f32) + feat_b      # (B, 64)
    lane_f = lax.broadcasted_iota(jnp.int32, (B, FEAT_W), 1)
    feat = jnp.where(lane_f < TEXT_OUT, jnp.tanh(pre), pre)        # tanh on text only
    # Dropout after LSTM / inside EvidenceCollector is identity in eval mode.

    # ---- merged EvidenceCollectors: Linear -> BN(eval) -> Softplus ----------
    w2 = wp[U_W:W_POST_ROWS, :]                                    # (64, 384)
    y = jnp.dot(feat.astype(bf16), w2, preferred_element_type=f32) + bev
    e = _softplus(y * bn_sc + bn_sh)                               # (B, 384)
    ea = (e[:, 0:EV_SLAB] + e[:, EV_SLAB:2 * EV_SLAB]
          + e[:, 2 * EV_SLAB:3 * EV_SLAB]) * (1.0 / NUM_VIEWS)
    out_ref[...] = jnp.concatenate([e, ea], axis=1)                # one lane-dense store


# ------------------------- parameter construction ----------------------------
def _normal(key, shape, scale=0.1):
    return (scale * jax.random.normal(key, shape)).astype(jnp.float32)


def _pack_av_params(pa, pv):
    """Pack two independent 1-layer LSTM+Linear branches into one block-diagonal,
    lane-aligned weight set: audio occupies lanes [0,HID_PAD), video lanes
    [HID_PAD,HID_W) of the combined hidden state; each gate gets a 128-lane slab.
    NOTE: `b` stands for the summed PyTorch b_ih + b_hh."""
    da, ha = pa["wih_t"].shape[0], pa["whh_t"].shape[0]
    dv, hv = pv["wih_t"].shape[0], pv["whh_t"].shape[0]
    oa, ov = pa["wlin_t"].shape[1], pv["wlin_t"].shape[1]
    assert ha <= HID_PAD and hv <= HID_PAD
    wih = jnp.zeros((da + dv, GATE_W), jnp.float32)
    whh = jnp.zeros((HID_W, GATE_W), jnp.float32)
    b = jnp.zeros((1, GATE_W), jnp.float32)
    for k in range(4):                      # PyTorch gate order: i, f, g, o
        ca = k * HID_W                      # audio sub-slab start (lanes)
        cv = k * HID_W + HID_PAD            # video sub-slab start
        wih = wih.at[0:da, ca:ca + ha].set(pa["wih_t"][:, k * ha:(k + 1) * ha])
        wih = wih.at[da:, cv:cv + hv].set(pv["wih_t"][:, k * hv:(k + 1) * hv])
        whh = whh.at[0:ha, ca:ca + ha].set(pa["whh_t"][:, k * ha:(k + 1) * ha])
        whh = whh.at[HID_PAD:HID_PAD + hv, cv:cv + hv].set(
            pv["whh_t"][:, k * hv:(k + 1) * hv])
        b = b.at[:, ca:ca + ha].set(pa["b"][:, k * ha:(k + 1) * ha])
        b = b.at[:, cv:cv + hv].set(pv["b"][:, k * hv:(k + 1) * hv])
    wlin = jnp.zeros((HID_W, oa + ov), jnp.float32)
    wlin = wlin.at[0:ha, 0:oa].set(pa["wlin_t"])
    wlin = wlin.at[HID_PAD:HID_PAD + hv, oa:].set(pv["wlin_t"])
    blin = jnp.concatenate([pa["blin"], pv["blin"]], axis=1)
    return {"wih": wih, "whh": whh, "b": b, "wlin": wlin, "blin": blin}


def init_params(key):
    """Build logical parameters, then pack them into the 3 lane-dense kernel slabs."""
    ks = jax.random.split(key, 8)

    # text stand-in encoder — fold embedding @ output-linear host-side
    emb = _normal(ks[0], (VOCAB, TEXT_EMB))
    tw = _normal(ks[1], (TEXT_EMB, TEXT_OUT))
    tb = _normal(ks[2], (1, TEXT_OUT))
    text_w_folded = jnp.dot(emb, tw)                         # (VOCAB, TEXT_OUT)

    def lstm_params(k, in_size, hidden, out_size):
        k = jax.random.split(k, 5)
        return {
            "wih_t": _normal(k[0], (in_size, 4 * hidden)),
            "whh_t": _normal(k[1], (hidden, 4 * hidden)),
            "b": _normal(k[2], (1, 4 * hidden)),             # b_ih + b_hh summed
            "wlin_t": _normal(k[3], (hidden, out_size)),
            "blin": _normal(k[4], (1, out_size)),
        }

    pa = lstm_params(ks[3], AUDIO_IN, A_HIDDEN, AUDIO_OUT)
    pv = lstm_params(ks[4], VIDEO_IN, V_HIDDEN, VIDEO_OUT)
    av = _pack_av_params(pa, pv)

    def evidence_params(k, in_dim):
        k = jax.random.split(k, 2)
        gamma = jnp.ones((1, NUM_CLASSES), jnp.float32)
        beta = jnp.zeros((1, NUM_CLASSES), jnp.float32)
        running_mean = jnp.zeros((1, NUM_CLASSES), jnp.float32)
        running_var = jnp.ones((1, NUM_CLASSES), jnp.float32)
        scale = gamma / jnp.sqrt(running_var + BN_EPS)
        shift = beta - running_mean * scale
        return {"w_t": _normal(k[0], (in_dim, NUM_CLASSES)),
                "b": _normal(k[1], (1, NUM_CLASSES)),
                "scale": scale, "shift": shift}

    ev = [evidence_params(ks[5], TEXT_OUT),
          evidence_params(ks[6], AUDIO_OUT),
          evidence_params(ks[7], VIDEO_OUT)]

    # ---- pack slab 1: [Wih ; Whh] (bf16, MXU operand) ----
    w_lstm = jnp.concatenate([av["wih"], av["whh"]], axis=0).astype(jnp.bfloat16)

    # ---- pack slab 2: post-LSTM weights (bf16) ----
    #   rows 0:128       cols 32:64   -> wlin        (h -> av_feat)
    #   rows 128:160     cols 0:32    -> emb @ tw    (counts -> text_feat)
    #   rows 160:224     cols 0:384   -> merged evidence weights (feat -> 3 views)
    w_post = jnp.zeros((W_POST_ROWS, EV_W), jnp.float32)
    w_post = w_post.at[0:HID_W, TEXT_OUT:FEAT_W].set(av["wlin"])
    w_post = w_post.at[HID_W:HID_W + VOCAB, 0:TEXT_OUT].set(text_w_folded)
    o = U_W
    w_post = w_post.at[o:o + TEXT_OUT, 0:NUM_CLASSES].set(ev[0]["w_t"])
    w_post = w_post.at[o + TEXT_OUT:o + TEXT_OUT + AUDIO_OUT,
                       EV_SLAB:EV_SLAB + NUM_CLASSES].set(ev[1]["w_t"])
    w_post = w_post.at[o + TEXT_OUT + AUDIO_OUT:o + FEAT_W,
                       2 * EV_SLAB:2 * EV_SLAB + NUM_CLASSES].set(ev[2]["w_t"])
    w_post = w_post.astype(jnp.bfloat16)

    # ---- pack slab 3: all biases / folded-BN scale & shift (f32, (8,512)) ----
    bias_slab = jnp.zeros((8, GATE_W), jnp.float32)
    bias_slab = bias_slab.at[0, :].set(av["b"][0])                       # gate bias
    bias_slab = bias_slab.at[1, 0:TEXT_OUT].set(tb[0])                   # text bias
    bias_slab = bias_slab.at[1, TEXT_OUT:FEAT_W].set(av["blin"][0])      # av bias
    for v, p in enumerate(ev):
        s = v * EV_SLAB
        bias_slab = bias_slab.at[2, s:s + NUM_CLASSES].set(p["b"][0])
        bias_slab = bias_slab.at[3, s:s + NUM_CLASSES].set(p["scale"][0])
        bias_slab = bias_slab.at[4, s:s + NUM_CLASSES].set(p["shift"][0])

    return {"w_lstm": w_lstm, "w_post": w_post, "bias": bias_slab}


# ------------------------------ full forward ---------------------------------
@jax.jit
def self_mm_forward(params, text, audio_pack, video_pack):
    audio, audio_lengths = audio_pack
    video, video_lengths = video_pack
    B, _, L = text.shape
    T = audio.shape[1]

    mask = text[:, 1, :]                                   # (B, L)
    text_lengths = jnp.sum(mask, axis=1)                   # (B,) float

    if ALIGNED:
        a_len, v_len = text_lengths, text_lengths
    else:
        a_len = audio_lengths.astype(jnp.float32)
        v_len = video_lengths.astype(jnp.float32)

    # pack ids / mask / [a_len|v_len] into one (3, B, L) slab (single DMA)
    lens_row = jnp.zeros((B, L), jnp.float32)
    lens_row = lens_row.at[:, 0].set(a_len)
    lens_row = lens_row.at[:, 1].set(v_len)
    text_pack = jnp.stack([text[:, 0, :], mask, lens_row], axis=0)   # (3, B, L)

    # both modalities side-by-side on the feature (lane) axis, made TIME-MAJOR
    av_x = jnp.concatenate([audio, video], axis=-1)        # (B, T, DW)
    x_tm = jnp.transpose(av_x, (1, 0, 2)).reshape(T * B, DW).astype(jnp.bfloat16)

    out = pl.pallas_call(
        self_mm_fused_kernel,
        out_shape=jax.ShapeDtypeStruct((B, (NUM_VIEWS + 1) * EV_SLAB), jnp.float32),
        in_specs=[VMEM_SPEC] * 5,
        out_specs=VMEM_SPEC,
    )(text_pack, x_tm, params["w_lstm"], params["w_post"], params["bias"])

    C = NUM_CLASSES
    evidences = {v: out[:, v * EV_SLAB:v * EV_SLAB + C] for v in range(NUM_VIEWS)}
    evidence_a = out[:, NUM_VIEWS * EV_SLAB:NUM_VIEWS * EV_SLAB + C]
    return evidences, evidence_a


# ---------------------------------- main --------------------------------------
if __name__ == "__main__":
    key = jax.random.PRNGKey(0)
    k_param, k_ids, k_a, k_v = jax.random.split(key, 4)

    params = init_params(k_param)

    # text: (B, 3, L)  rows = [input_ids, attention_mask, segment_ids]
    ids = jax.random.randint(k_ids, (BATCH, SEQ_TEXT), 0, VOCAB)
    text_lens = jnp.array([SEQ_TEXT, 5], dtype=jnp.int32)
    pos = jnp.arange(SEQ_TEXT)[None, :]
    attn_mask = (pos < text_lens[:, None]).astype(jnp.float32)
    seg = jnp.zeros((BATCH, SEQ_TEXT), jnp.float32)
    text = jnp.stack([ids.astype(jnp.float32), attn_mask, seg], axis=1)

    audio = jax.random.normal(k_a, (BATCH, SEQ_AV, AUDIO_IN), jnp.float32)
    audio_lengths = jnp.array([SEQ_AV, 5], dtype=jnp.int32)
    video = jax.random.normal(k_v, (BATCH, SEQ_AV, VIDEO_IN), jnp.float32)
    video_lengths = jnp.array([SEQ_AV, 6], dtype=jnp.int32)

    evidences, evidence_a = self_mm_forward(
        params, text, (audio, audio_lengths), (video, video_lengths))

    jax.block_until_ready(evidence_a)
    for v in range(NUM_VIEWS):
        jax.block_until_ready(evidences[v])

    assert evidence_a.shape == (BATCH, NUM_CLASSES)
    assert all(evidences[v].shape == (BATCH, NUM_CLASSES) for v in range(NUM_VIEWS))
    assert bool(jnp.all(jnp.isfinite(evidence_a)))
    assert all(bool(jnp.all(evidences[v] >= 0.0)) for v in range(NUM_VIEWS))
    print("KERNEL_OK")
</pallas_src>

<mosaic_0001>
module attributes {stable_mosaic.version = 11 : i64} {
  func.func @self_mm_fused_kernel(%arg0: memref<3x2x8xf32, #tpu.memory_space<vmem>>, %arg1: memref<16x32xbf16, #tpu.memory_space<vmem>>, %arg2: memref<160x512xbf16, #tpu.memory_space<vmem>>, %arg3: memref<224x384xbf16, #tpu.memory_space<vmem>>, %arg4: memref<8x512xf32, #tpu.memory_space<vmem>>, %arg5: memref<2x512xf32, #tpu.memory_space<vmem>>) attributes {dimension_semantics = [], scalar_prefetch = 0 : i64, scratch_operands = 0 : i64, tpu.core_type = #tpu.core_type<tc>} {
    %c0 = arith.constant 0 : index
    %c0_0 = arith.constant 0 : index
    %0 = vector.load %arg4[%c0, %c0_0] : memref<8x512xf32, #tpu.memory_space<vmem>>, vector<8x512xf32>
    %1 = vector.extract_strided_slice %0 {offsets = [0, 0], sizes = [1, 512], strides = [1, 1]} : vector<8x512xf32> to vector<1x512xf32>
    %2 = vector.extract_strided_slice %0 {offsets = [1, 0], sizes = [1, 64], strides = [1, 1]} : vector<8x512xf32> to vector<1x64xf32>
    %3 = vector.extract_strided_slice %0 {offsets = [2, 0], sizes = [1, 384], strides = [1, 1]} : vector<8x512xf32> to vector<1x384xf32>
    %4 = vector.extract_strided_slice %0 {offsets = [3, 0], sizes = [1, 384], strides = [1, 1]} : vector<8x512xf32> to vector<1x384xf32>
    %5 = vector.extract_strided_slice %0 {offsets = [4, 0], sizes = [1, 384], strides = [1, 1]} : vector<8x512xf32> to vector<1x384xf32>
    %c0_1 = arith.constant 0 : index
    %c0_2 = arith.constant 0 : index
    %c0_3 = arith.constant 0 : index
    %6 = vector.load %arg0[%c0_1, %c0_2, %c0_3] : memref<3x2x8xf32, #tpu.memory_space<vmem>>, vector<3x2x8xf32>
    %7 = vector.extract_strided_slice %6 {offsets = [0, 0, 0], sizes = [1, 2, 8], strides = [1, 1, 1]} : vector<3x2x8xf32> to vector<1x2x8xf32>
    %8 = vector.shape_cast %7 : vector<1x2x8xf32> to vector<2x8xf32>
    %9 = arith.fptosi %8 : vector<2x8xf32> to vector<2x8xi32>
    %10 = vector.extract_strided_slice %6 {offsets = [1, 0, 0], sizes = [1, 2, 8], strides = [1, 1, 1]} : vector<3x2x8xf32> to vector<1x2x8xf32>
    %11 = vector.shape_cast %10 : vector<1x2x8xf32> to vector<2x8xf32>
    %12 = vector.extract_strided_slice %6 {offsets = [2, 0, 0], sizes = [1, 2, 8], strides = [1, 1, 1]} : vector<3x2x8xf32> to vector<1x2x8xf32>
    %13 = vector.shape_cast %12 : vector<1x2x8xf32> to vector<2x8xf32>
    %14 = tpu.iota {dimensions = array<i32: 2>} : vector<2x8x32xi32>
    %15 = vector.shape_cast %9 : vector<2x8xi32> to vector<2x8x1xi32>
    %16 = vector.broadcast %15 : vector<2x8x1xi32> to vector<2x8x32xi32>
    %17 = arith.cmpi eq, %16, %14 : vector<2x8x32xi32>
    %18 = vector.shape_cast %11 : vector<2x8xf32> to vector<2x8x1xf32>
    %cst = arith.constant 0.000000e+00 : f32
    %19 = vector.shape_cast %18 : vector<2x8x1xf32> to vector<2x8x1xf32>
    %20 = vector.broadcast %19 : vector<2x8x1xf32> to vector<2x8x32xf32>
    %21 = vector.broadcast %cst : f32 to vector<2x8x32xf32>
    %22 = arith.select %17, %20, %21 : vector<2x8x32xi1>, vector<2x8x32xf32>
    %cst_4 = arith.constant dense<0.000000e+00> : vector<2x32xf32>
    %23 = vector.multi_reduction <add>, %22, %cst_4 [1] : vector<2x8x32xf32> to vector<2x32xf32>
    %cst_5 = arith.constant dense<0.000000e+00> : vector<2xf32>
    %24 = vector.multi_reduction <add>, %11, %cst_5 [1] : vector<2x8xf32> to vector<2xf32>
    %25 = vector.shape_cast %24 : vector<2xf32> to vector<2x1xf32>
    %cst_6 = arith.constant 1.000000e+00 : f32
    %26 = vector.broadcast %cst_6 : f32 to vector<2x1xf32>
    %27 = arith.maximumf %25, %26 : vector<2x1xf32>
    %28 = vector.broadcast %27 : vector<2x1xf32> to vector<2x32xf32>
    %29 = arith.divf %23, %28 : vector<2x32xf32>
    %c0_7 = arith.constant 0 : index
    %c0_8 = arith.constant 0 : index
    %30 = vector.load %arg2[%c0_7, %c0_8] : memref<160x512xbf16, #tpu.memory_space<vmem>>, vector<160x512xbf16>
    %31 = vector.extract_strided_slice %30 {offsets = [0, 0], sizes = [32, 512], strides = [1, 1]} : vector<160x512xbf16> to vector<32x512xbf16>
    %32 = vector.extract_strided_slice %30 {offsets = [32, 0], sizes = [128, 512], strides = [1, 1]} : vector<160x512xbf16> to vector<128x512xbf16>
    %c0_9 = arith.constant 0 : index
    %c0_10 = arith.constant 0 : index
    %33 = vector.load %arg1[%c0_9, %c0_10] : memref<16x32xbf16, #tpu.memory_space<vmem>>, vector<16x32xbf16>
    %cst_11 = arith.constant dense<0.000000e+00> : vector<16x512xf32>
    %34 = tpu.matmul %33, %31, %cst_11 {dimension_numbers = #tpu.dot_dimension_numbers<[1], [0], [0], [1], [0, 0, 1, 1], [], []>} : vector<16x32xbf16>, vector<32x512xbf16>, vector<16x512xf32> -> vector<16x512xf32>
    %35 = vector.broadcast %1 : vector<1x512xf32> to vector<16x512xf32>
    %36 = arith.addf %34, %35 : vector<16x512xf32>
    %37 = vector.extract_strided_slice %13 {offsets = [0, 0], sizes = [2, 1], strides = [1, 1]} : vector<2x8xf32> to vector<2x1xf32>
    %38 = vector.extract_strided_slice %13 {offsets = [0, 1], sizes = [2, 1], strides = [1, 1]} : vector<2x8xf32> to vector<2x1xf32>
    %39 = tpu.iota {dimensions = array<i32: 1>} : vector<2x128xi32>
    %c64_i32 = arith.constant 64 : i32
    %40 = vector.broadcast %c64_i32 : i32 to vector<2x128xi32>
    %41 = arith.cmpi slt, %39, %40 : vector<2x128xi32>
    %42 = vector.shape_cast %37 : vector<2x1xf32> to vector<2x1xf32>
    %43 = vector.broadcast %42 : vector<2x1xf32> to vector<2x128xf32>
    %44 = vector.shape_cast %38 : vector<2x1xf32> to vector<2x1xf32>
    %45 = vector.broadcast %44 : vector<2x1xf32> to vector<2x128xf32>
    %46 = arith.select %41, %43, %45 : vector<2x128xi1>, vector<2x128xf32>
    %cst_12 = arith.constant 0.000000e+00 : f32
    %47 = vector.broadcast %cst_12 : f32 to vector<2x128xf32>
    %cst_13 = arith.constant 0.000000e+00 : f32
    %48 = vector.broadcast %cst_13 : f32 to vector<2x128xf32>
    %49 = vector.extract_strided_slice %36 {offsets = [0, 0], sizes = [2, 512], strides = [1, 1]} : vector<16x512xf32> to vector<2x512xf32>
    %50 = arith.truncf %47 : vector<2x128xf32> to vector<2x128xbf16>
    %cst_14 = arith.constant dense<0.000000e+00> : vector<2x512xf32>
    %51 = tpu.matmul %50, %32, %cst_14 {dimension_numbers = #tpu.dot_dimension_numbers<[1], [0], [0], [1], [0, 0, 1, 1], [], []>} : vector<2x128xbf16>, vector<128x512xbf16>, vector<2x512xf32> -> vector<2x512xf32>
    %52 = arith.addf %49, %51 : vector<2x512xf32>
    %53 = vector.extract_strided_slice %52 {offsets = [0, 0], sizes = [2, 128], strides = [1, 1]} : vector<2x512xf32> to vector<2x128xf32>
    %54 = arith.negf %53 : vector<2x128xf32>
    %55 = math.exp %54 : vector<2x128xf32>
    %cst_15 = arith.constant 1.000000e+00 : f32
    %56 = vector.broadcast %cst_15 : f32 to vector<2x128xf32>
    %57 = arith.addf %56, %55 : vector<2x128xf32>
    %58 = arith.divf %56, %57 : vector<2x128xf32>
    %59 = vector.extract_strided_slice %52 {offsets = [0, 128], sizes = [2, 128], strides = [1, 1]} : vector<2x512xf32> to vector<2x128xf32>
    %60 = arith.negf %59 : vector<2x128xf32>
    %61 = math.exp %60 : vector<2x128xf32>
    %cst_16 = arith.constant 1.000000e+00 : f32
    %62 = vector.broadcast %cst_16 : f32 to vector<2x128xf32>
    %63 = arith.addf %62, %61 : vector<2x128xf32>
    %64 = arith.divf %62, %63 : vector<2x128xf32>
    %65 = vector.extract_strided_slice %52 {offsets = [0, 256], sizes = [2, 128], strides = [1, 1]} : vector<2x512xf32> to vector<2x128xf32>
    %66 = math.tanh %65 : vector<2x128xf32>
    %67 = vector.extract_strided_slice %52 {offsets = [0, 384], sizes = [2, 128], strides = [1, 1]} : vector<2x512xf32> to vector<2x128xf32>
    %68 = arith.negf %67 : vector<2x128xf32>
    %69 = math.exp %68 : vector<2x128xf32>
    %cst_17 = arith.constant 1.000000e+00 : f32
    %70 = vector.broadcast %cst_17 : f32 to vector<2x128xf32>
    %71 = arith.addf %70, %69 : vector<2x128xf32>
    %72 = arith.divf %70, %71 : vector<2x128xf32>
    %73 = arith.mulf %64, %48 : vector<2x128xf32>
    %74 = arith.mulf %58, %66 : vector<2x128xf32>
    %75 = arith.addf %73, %74 : vector<2x128xf32>
    %76 = math.tanh %75 : vector<2x128xf32>
    %77 = arith.mulf %72, %76 : vector<2x128xf32>
    %cst_18 = arith.constant 0.000000e+00 : f32
    %78 = vector.broadcast %cst_18 : f32 to vector<2x128xf32>
    %79 = arith.cmpf ogt, %46, %78 : vector<2x128xf32>
    %80 = arith.select %79, %77, %47 : vector<2x128xi1>, vector<2x128xf32>
    %81 = arith.select %79, %75, %48 : vector<2x128xi1>, vector<2x128xf32>
    %82 = vector.extract_strided_slice %36 {offsets = [2, 0], sizes = [2, 512], strides = [1, 1]} : vector<16x512xf32> to vector<2x512xf32>
    %83 = arith.truncf %80 : vector<2x128xf32> to vector<2x128xbf16>
    %cst_19 = arith.constant dense<0.000000e+00> : vector<2x512xf32>
    %84 = tpu.matmul %83, %32, %cst_19 {dimension_numbers = #tpu.dot_dimension_numbers<[1], [0], [0], [1], [0, 0, 1, 1], [], []>} : vector<2x128xbf16>, vector<128x512xbf16>, vector<2x512xf32> -> vector<2x512xf32>
    %85 = arith.addf %82, %84 : vector<2x512xf32>
    %86 = vector.extract_strided_slice %85 {offsets = [0, 0], sizes = [2, 128], strides = [1, 1]} : vector<2x512xf32> to vector<2x128xf32>
    %87 = arith.negf %86 : vector<2x128xf32>
    %88 = math.exp %87 : vector<2x128xf32>
    %cst_20 = arith.constant 1.000000e+00 : f32
    %89 = vector.broadcast %cst_20 : f32 to vector<2x128xf32>
    %90 = arith.addf %89, %88 : vector<2x128xf32>
    %91 = arith.divf %89, %90 : vector<2x128xf32>
    %92 = vector.extract_strided_slice %85 {offsets = [0, 128], sizes = [2, 128], strides = [1, 1]} : vector<2x512xf32> to vector<2x128xf32>
    %93 = arith.negf %92 : vector<2x128xf32>
    %94 = math.exp %93 : vector<2x128xf32>
    %cst_21 = arith.constant 1.000000e+00 : f32
    %95 = vector.broadcast %cst_21 : f32 to vector<2x128xf32>
    %96 = arith.addf %95, %94 : vector<2x128xf32>
    %97 = arith.divf %95, %96 : vector<2x128xf32>
    %98 = vector.extract_strided_slice %85 {offsets = [0, 256], sizes = [2, 128], strides = [1, 1]} : vector<2x512xf32> to vector<2x128xf32>
    %99 = math.tanh %98 : vector<2x128xf32>
    %100 = vector.extract_strided_slice %85 {offsets = [0, 384], sizes = [2, 128], strides = [1, 1]} : vector<2x512xf32> to vector<2x128xf32>
    %101 = arith.negf %100 : vector<2x128xf32>
    %102 = math.exp %101 : vector<2x128xf32>
    %cst_22 = arith.constant 1.000000e+00 : f32
    %103 = vector.broadcast %cst_22 : f32 to vector<2x128xf32>
    %104 = arith.addf %103, %102 : vector<2x128xf32>
    %105 = arith.divf %103, %104 : vector<2x128xf32>
    %106 = arith.mulf %97, %81 : vector<2x128xf32>
    %107 = arith.mulf %91, %99 : vector<2x128xf32>
    %108 = arith.addf %106, %107 : vector<2x128xf32>
    %109 = math.tanh %108 : vector<2x128xf32>
    %110 = arith.mulf %105, %109 : vector<2x128xf32>
    %cst_23 = arith.constant 1.000000e+00 : f32
    %111 = vector.broadcast %cst_23 : f32 to vector<2x128xf32>
    %112 = arith.cmpf ogt, %46, %111 : vector<2x128xf32>
    %113 = arith.select %112, %110, %80 : vector<2x128xi1>, vector<2x128xf32>
    %114 = arith.select %112, %108, %81 : vector<2x128xi1>, vector<2x128xf32>
    %115 = vector.extract_strided_slice %36 {offsets = [4, 0], sizes = [2, 512], strides = [1, 1]} : vector<16x512xf32> to vector<2x512xf32>
    %116 = arith.truncf %113 : vector<2x128xf32> to vector<2x128xbf16>
    %cst_24 = arith.constant dense<0.000000e+00> : vector<2x512xf32>
    %117 = tpu.matmul %116, %32, %cst_24 {dimension_numbers = #tpu.dot_dimension_numbers<[1], [0], [0], [1], [0, 0, 1, 1], [], []>} : vector<2x128xbf16>, vector<128x512xbf16>, vector<2x512xf32> -> vector<2x512xf32>
    %118 = arith.addf %115, %117 : vector<2x512xf32>
    %119 = vector.extract_strided_slice %118 {offsets = [0, 0], sizes = [2, 128], strides = [1, 1]} : vector<2x512xf32> to vector<2x128xf32>
    %120 = arith.negf %119 : vector<2x128xf32>
    %121 = math.exp %120 : vector<2x128xf32>
    %cst_25 = arith.constant 1.000000e+00 : f32
    %122 = vector.broadcast %cst_25 : f32 to vector<2x128xf32>
    %123 = arith.addf %122, %121 : vector<2x128xf32>
    %124 = arith.divf %122, %123 : vector<2x128xf32>
    %125 = vector.extract_strided_slice %118 {offsets = [0, 128], sizes = [2, 128], strides = [1, 1]} : vector<2x512xf32> to vector<2x128xf32>
    %126 = arith.negf %125 : vector<2x128xf32>
    %127 = math.exp %126 : vector<2x128xf32>
    %cst_26 = arith.constant 1.000000e+00 : f32
    %128 = vector.broadcast %cst_26 : f32 to vector<2x128xf32>
    %129 = arith.addf %128, %127 : vector<2x128xf32>
    %130 = arith.divf %128, %129 : vector<2x128xf32>
    %131 = vector.extract_strided_slice %118 {offsets = [0, 256], sizes = [2, 128], strides = [1, 1]} : vector<2x512xf32> to vector<2x128xf32>
    %132 = math.tanh %131 : vector<2x128xf32>
    %133 = vector.extract_strided_slice %118 {offsets = [0, 384], sizes = [2, 128], strides = [1, 1]} : vector<2x512xf32> to vector<2x128xf32>
    %134 = arith.negf %133 : vector<2x128xf32>
    %135 = math.exp %134 : vector<2x128xf32>
    %cst_27 = arith.constant 1.000000e+00 : f32
    %136 = vector.broadcast %cst_27 : f32 to vector<2x128xf32>
    %137 = arith.addf %136, %135 : vector<2x128xf32>
    %138 = arith.divf %136, %137 : vector<2x128xf32>
    %139 = arith.mulf %130, %114 : vector<2x128xf32>
    %140 = arith.mulf %124, %132 : vector<2x128xf32>
    %141 = arith.addf %139, %140 : vector<2x128xf32>
    %142 = math.tanh %141 : vector<2x128xf32>
    %143 = arith.mulf %138, %142 : vector<2x128xf32>
    %cst_28 = arith.constant 2.000000e+00 : f32
    %144 = vector.broadcast %cst_28 : f32 to vector<2x128xf32>
    %145 = arith.cmpf ogt, %46, %144 : vector<2x128xf32>
    %146 = arith.select %145, %143, %113 : vector<2x128xi1>, vector<2x128xf32>
    %147 = arith.select %145, %141, %114 : vector<2x128xi1>, vector<2x128xf32>
    %148 = vector.extract_strided_slice %36 {offsets = [6, 0], sizes = [2, 512], strides = [1, 1]} : vector<16x512xf32> to vector<2x512xf32>
    %149 = arith.truncf %146 : vector<2x128xf32> to vector<2x128xbf16>
    %cst_29 = arith.constant dense<0.000000e+00> : vector<2x512xf32>
    %150 = tpu.matmul %149, %32, %cst_29 {dimension_numbers = #tpu.dot_dimension_numbers<[1], [0], [0], [1], [0, 0, 1, 1], [], []>} : vector<2x128xbf16>, vector<128x512xbf16>, vector<2x512xf32> -> vector<2x512xf32>
    %151 = arith.addf %148, %150 : vector<2x512xf32>
    %152 = vector.extract_strided_slice %151 {offsets = [0, 0], sizes = [2, 128], strides = [1, 1]} : vector<2x512xf32> to vector<2x128xf32>
    %153 = arith.negf %152 : vector<2x128xf32>
    %154 = math.exp %153 : vector<2x128xf32>
    %cst_30 = arith.constant 1.000000e+00 : f32
    %155 = vector.broadcast %cst_30 : f32 to vector<2x128xf32>
    %156 = arith.addf %155, %154 : vector<2x128xf32>
    %157 = arith.divf %155, %156 : vector<2x128xf32>
    %158 = vector.extract_strided_slice %151 {offsets = [0, 128], sizes = [2, 128], strides = [1, 1]} : vector<2x512xf32> to vector<2x128xf32>
    %159 = arith.negf %158 : vector<2x128xf32>
    %160 = math.exp %159 : vector<2x128xf32>
    %cst_31 = arith.constant 1.000000e+00 : f32
    %161 = vector.broadcast %cst_31 : f32 to vector<2x128xf32>
    %162 = arith.addf %161, %160 : vector<2x128xf32>
    %163 = arith.divf %161, %162 : vector<2x128xf32>
    %164 = vector.extract_strided_slice %151 {offsets = [0, 256], sizes = [2, 128], strides = [1, 1]} : vector<2x512xf32> to vector<2x128xf32>
    %165 = math.tanh %164 : vector<2x128xf32>
    %166 = vector.extract_strided_slice %151 {offsets = [0, 384], sizes = [2, 128], strides = [1, 1]} : vector<2x512xf32> to vector<2x128xf32>
    %167 = arith.negf %166 : vector<2x128xf32>
    %168 = math.exp %167 : vector<2x128xf32>
    %cst_32 = arith.constant 1.000000e+00 : f32
    %169 = vector.broadcast %cst_32 : f32 to vector<2x128xf32>
    %170 = arith.addf %169, %168 : vector<2x128xf32>
    %171 = arith.divf %169, %170 : vector<2x128xf32>
    %172 = arith.mulf %163, %147 : vector<2x128xf32>
    %173 = arith.mulf %157, %165 : vector<2x128xf32>
    %174 = arith.addf %172, %173 : vector<2x128xf32>
    %175 = math.tanh %174 : vector<2x128xf32>
    %176 = arith.mulf %171, %175 : vector<2x128xf32>
    %cst_33 = arith.constant 3.000000e+00 : f32
    %177 = vector.broadcast %cst_33 : f32 to vector<2x128xf32>
    %178 = arith.cmpf ogt, %46, %177 : vector<2x128xf32>
    %179 = arith.select %178, %176, %146 : vector<2x128xi1>, vector<2x128xf32>
    %180 = arith.select %178, %174, %147 : vector<2x128xi1>, vector<2x128xf32>
    %181 = vector.extract_strided_slice %36 {offsets = [8, 0], sizes = [2, 512], strides = [1, 1]} : vector<16x512xf32> to vector<2x512xf32>
    %182 = arith.truncf %179 : vector<2x128xf32> to vector<2x128xbf16>
    %cst_34 = arith.constant dense<0.000000e+00> : vector<2x512xf32>
    %183 = tpu.matmul %182, %32, %cst_34 {dimension_numbers = #tpu.dot_dimension_numbers<[1], [0], [0], [1], [0, 0, 1, 1], [], []>} : vector<2x128xbf16>, vector<128x512xbf16>, vector<2x512xf32> -> vector<2x512xf32>
    %184 = arith.addf %181, %183 : vector<2x512xf32>
    %185 = vector.extract_strided_slice %184 {offsets = [0, 0], sizes = [2, 128], strides = [1, 1]} : vector<2x512xf32> to vector<2x128xf32>
    %186 = arith.negf %185 : vector<2x128xf32>
    %187 = math.exp %186 : vector<2x128xf32>
    %cst_35 = arith.constant 1.000000e+00 : f32
    %188 = vector.broadcast %cst_35 : f32 to vector<2x128xf32>
    %189 = arith.addf %188, %187 : vector<2x128xf32>
    %190 = arith.divf %188, %189 : vector<2x128xf32>
    %191 = vector.extract_strided_slice %184 {offsets = [0, 128], sizes = [2, 128], strides = [1, 1]} : vector<2x512xf32> to vector<2x128xf32>
    %192 = arith.negf %191 : vector<2x128xf32>
    %193 = math.exp %192 : vector<2x128xf32>
    %cst_36 = arith.constant 1.000000e+00 : f32
    %194 = vector.broadcast %cst_36 : f32 to vector<2x128xf32>
    %195 = arith.addf %194, %193 : vector<2x128xf32>
    %196 = arith.divf %194, %195 : vector<2x128xf32>
    %197 = vector.extract_strided_slice %184 {offsets = [0, 256], sizes = [2, 128], strides = [1, 1]} : vector<2x512xf32> to vector<2x128xf32>
    %198 = math.tanh %197 : vector<2x128xf32>
    %199 = vector.extract_strided_slice %184 {offsets = [0, 384], sizes = [2, 128], strides = [1, 1]} : vector<2x512xf32> to vector<2x128xf32>
    %200 = arith.negf %199 : vector<2x128xf32>
    %201 = math.exp %200 : vector<2x128xf32>
    %cst_37 = arith.constant 1.000000e+00 : f32
    %202 = vector.broadcast %cst_37 : f32 to vector<2x128xf32>
    %203 = arith.addf %202, %201 : vector<2x128xf32>
    %204 = arith.divf %202, %203 : vector<2x128xf32>
    %205 = arith.mulf %196, %180 : vector<2x128xf32>
    %206 = arith.mulf %190, %198 : vector<2x128xf32>
    %207 = arith.addf %205, %206 : vector<2x128xf32>
    %208 = math.tanh %207 : vector<2x128xf32>
    %209 = arith.mulf %204, %208 : vector<2x128xf32>
    %cst_38 = arith.constant 4.000000e+00 : f32
    %210 = vector.broadcast %cst_38 : f32 to vector<2x128xf32>
    %211 = arith.cmpf ogt, %46, %210 : vector<2x128xf32>
    %212 = arith.select %211, %209, %179 : vector<2x128xi1>, vector<2x128xf32>
    %213 = arith.select %211, %207, %180 : vector<2x128xi1>, vector<2x128xf32>
    %214 = vector.extract_strided_slice %36 {offsets = [10, 0], sizes = [2, 512], strides = [1, 1]} : vector<16x512xf32> to vector<2x512xf32>
    %215 = arith.truncf %212 : vector<2x128xf32> to vector<2x128xbf16>
    %cst_39 = arith.constant dense<0.000000e+00> : vector<2x512xf32>
    %216 = tpu.matmul %215, %32, %cst_39 {dimension_numbers = #tpu.dot_dimension_numbers<[1], [0], [0], [1], [0, 0, 1, 1], [], []>} : vector<2x128xbf16>, vector<128x512xbf16>, vector<2x512xf32> -> vector<2x512xf32>
    %217 = arith.addf %214, %216 : vector<2x512xf32>
    %218 = vector.extract_strided_slice %217 {offsets = [0, 0], sizes = [2, 128], strides = [1, 1]} : vector<2x512xf32> to vector<2x128xf32>
    %219 = arith.negf %218 : vector<2x128xf32>
    %220 = math.exp %219 : vector<2x128xf32>
    %cst_40 = arith.constant 1.000000e+00 : f32
    %221 = vector.broadcast %cst_40 : f32 to vector<2x128xf32>
    %222 = arith.addf %221, %220 : vector<2x128xf32>
    %223 = arith.divf %221, %222 : vector<2x128xf32>
    %224 = vector.extract_strided_slice %217 {offsets = [0, 128], sizes = [2, 128], strides = [1, 1]} : vector<2x512xf32> to vector<2x128xf32>
    %225 = arith.negf %224 : vector<2x128xf32>
    %226 = math.exp %225 : vector<2x128xf32>
    %cst_41 = arith.constant 1.000000e+00 : f32
    %227 = vector.broadcast %cst_41 : f32 to vector<2x128xf32>
    %228 = arith.addf %227, %226 : vector<2x128xf32>
    %229 = arith.divf %227, %228 : vector<2x128xf32>
    %230 = vector.extract_strided_slice %217 {offsets = [0, 256], sizes = [2, 128], strides = [1, 1]} : vector<2x512xf32> to vector<2x128xf32>
    %231 = math.tanh %230 : vector<2x128xf32>
    %232 = vector.extract_strided_slice %217 {offsets = [0, 384], sizes = [2, 128], strides = [1, 1]} : vector<2x512xf32> to vector<2x128xf32>
    %233 = arith.negf %232 : vector<2x128xf32>
    %234 = math.exp %233 : vector<2x128xf32>
    %cst_42 = arith.constant 1.000000e+00 : f32
    %235 = vector.broadcast %cst_42 : f32 to vector<2x128xf32>
    %236 = arith.addf %235, %234 : vector<2x128xf32>
    %237 = arith.divf %235, %236 : vector<2x128xf32>
    %238 = arith.mulf %229, %213 : vector<2x128xf32>
    %239 = arith.mulf %223, %231 : vector<2x128xf32>
    %240 = arith.addf %238, %239 : vector<2x128xf32>
    %241 = math.tanh %240 : vector<2x128xf32>
    %242 = arith.mulf %237, %241 : vector<2x128xf32>
    %cst_43 = arith.constant 5.000000e+00 : f32
    %243 = vector.broadcast %cst_43 : f32 to vector<2x128xf32>
    %244 = arith.cmpf ogt, %46, %243 : vector<2x128xf32>
    %245 = arith.select %244, %242, %212 : vector<2x128xi1>, vector<2x128xf32>
    %246 = arith.select %244, %240, %213 : vector<2x128xi1>, vector<2x128xf32>
    %247 = vector.extract_strided_slice %36 {offsets = [12, 0], sizes = [2, 512], strides = [1, 1]} : vector<16x512xf32> to vector<2x512xf32>
    %248 = arith.truncf %245 : vector<2x128xf32> to vector<2x128xbf16>
    %cst_44 = arith.constant dense<0.000000e+00> : vector<2x512xf32>
    %249 = tpu.matmul %248, %32, %cst_44 {dimension_numbers = #tpu.dot_dimension_numbers<[1], [0], [0], [1], [0, 0, 1, 1], [], []>} : vector<2x128xbf16>, vector<128x512xbf16>, vector<2x512xf32> -> vector<2x512xf32>
    %250 = arith.addf %247, %249 : vector<2x512xf32>
    %251 = vector.extract_strided_slice %250 {offsets = [0, 0], sizes = [2, 128], strides = [1, 1]} : vector<2x512xf32> to vector<2x128xf32>
    %252 = arith.negf %251 : vector<2x128xf32>
    %253 = math.exp %252 : vector<2x128xf32>
    %cst_45 = arith.constant 1.000000e+00 : f32
    %254 = vector.broadcast %cst_45 : f32 to vector<2x128xf32>
    %255 = arith.addf %254, %253 : vector<2x128xf32>
    %256 = arith.divf %254, %255 : vector<2x128xf32>
    %257 = vector.extract_strided_slice %250 {offsets = [0, 128], sizes = [2, 128], strides = [1, 1]} : vector<2x512xf32> to vector<2x128xf32>
    %258 = arith.negf %257 : vector<2x128xf32>
    %259 = math.exp %258 : vector<2x128xf32>
    %cst_46 = arith.constant 1.000000e+00 : f32
    %260 = vector.broadcast %cst_46 : f32 to vector<2x128xf32>
    %261 = arith.addf %260, %259 : vector<2x128xf32>
    %262 = arith.divf %260, %261 : vector<2x128xf32>
    %263 = vector.extract_strided_slice %250 {offsets = [0, 256], sizes = [2, 128], strides = [1, 1]} : vector<2x512xf32> to vector<2x128xf32>
    %264 = math.tanh %263 : vector<2x128xf32>
    %265 = vector.extract_strided_slice %250 {offsets = [0, 384], sizes = [2, 128], strides = [1, 1]} : vector<2x512xf32> to vector<2x128xf32>
    %266 = arith.negf %265 : vector<2x128xf32>
    %267 = math.exp %266 : vector<2x128xf32>
    %cst_47 = arith.constant 1.000000e+00 : f32
    %268 = vector.broadcast %cst_47 : f32 to vector<2x128xf32>
    %269 = arith.addf %268, %267 : vector<2x128xf32>
    %270 = arith.divf %268, %269 : vector<2x128xf32>
    %271 = arith.mulf %262, %246 : vector<2x128xf32>
    %272 = arith.mulf %256, %264 : vector<2x128xf32>
    %273 = arith.addf %271, %272 : vector<2x128xf32>
    %274 = math.tanh %273 : vector<2x128xf32>
    %275 = arith.mulf %270, %274 : vector<2x128xf32>
    %cst_48 = arith.constant 6.000000e+00 : f32
    %276 = vector.broadcast %cst_48 : f32 to vector<2x128xf32>
    %277 = arith.cmpf ogt, %46, %276 : vector<2x128xf32>
    %278 = arith.select %277, %275, %245 : vector<2x128xi1>, vector<2x128xf32>
    %279 = arith.select %277, %273, %246 : vector<2x128xi1>, vector<2x128xf32>
    %280 = vector.extract_strided_slice %36 {offsets = [14, 0], sizes = [2, 512], strides = [1, 1]} : vector<16x512xf32> to vector<2x512xf32>
    %281 = arith.truncf %278 : vector<2x128xf32> to vector<2x128xbf16>
    %cst_49 = arith.constant dense<0.000000e+00> : vector<2x512xf32>
    %282 = tpu.matmul %281, %32, %cst_49 {dimension_numbers = #tpu.dot_dimension_numbers<[1], [0], [0], [1], [0, 0, 1, 1], [], []>} : vector<2x128xbf16>, vector<128x512xbf16>, vector<2x512xf32> -> vector<2x512xf32>
    %283 = arith.addf %280, %282 : vector<2x512xf32>
    %284 = vector.extract_strided_slice %283 {offsets = [0, 0], sizes = [2, 128], strides = [1, 1]} : vector<2x512xf32> to vector<2x128xf32>
    %285 = arith.negf %284 : vector<2x128xf32>
    %286 = math.exp %285 : vector<2x128xf32>
    %cst_50 = arith.constant 1.000000e+00 : f32
    %287 = vector.broadcast %cst_50 : f32 to vector<2x128xf32>
    %288 = arith.addf %287, %286 : vector<2x128xf32>
    %289 = arith.divf %287, %288 : vector<2x128xf32>
    %290 = vector.extract_strided_slice %283 {offsets = [0, 128], sizes = [2, 128], strides = [1, 1]} : vector<2x512xf32> to vector<2x128xf32>
    %291 = arith.negf %290 : vector<2x128xf32>
    %292 = math.exp %291 : vector<2x128xf32>
    %cst_51 = arith.constant 1.000000e+00 : f32
    %293 = vector.broadcast %cst_51 : f32 to vector<2x128xf32>
    %294 = arith.addf %293, %292 : vector<2x128xf32>
    %295 = arith.divf %293, %294 : vector<2x128xf32>
    %296 = vector.extract_strided_slice %283 {offsets = [0, 256], sizes = [2, 128], strides = [1, 1]} : vector<2x512xf32> to vector<2x128xf32>
    %297 = math.tanh %296 : vector<2x128xf32>
    %298 = vector.extract_strided_slice %283 {offsets = [0, 384], sizes = [2, 128], strides = [1, 1]} : vector<2x512xf32> to vector<2x128xf32>
    %299 = arith.negf %298 : vector<2x128xf32>
    %300 = math.exp %299 : vector<2x128xf32>
    %cst_52 = arith.constant 1.000000e+00 : f32
    %301 = vector.broadcast %cst_52 : f32 to vector<2x128xf32>
    %302 = arith.addf %301, %300 : vector<2x128xf32>
    %303 = arith.divf %301, %302 : vector<2x128xf32>
    %304 = arith.mulf %295, %279 : vector<2x128xf32>
    %305 = arith.mulf %289, %297 : vector<2x128xf32>
    %306 = arith.addf %304, %305 : vector<2x128xf32>
    %307 = math.tanh %306 : vector<2x128xf32>
    %308 = arith.mulf %303, %307 : vector<2x128xf32>
    %cst_53 = arith.constant 7.000000e+00 : f32
    %309 = vector.broadcast %cst_53 : f32 to vector<2x128xf32>
    %310 = arith.cmpf ogt, %46, %309 : vector<2x128xf32>
    %311 = arith.select %310, %308, %278 : vector<2x128xi1>, vector<2x128xf32>
    %c0_54 = arith.constant 0 : index
    %c0_55 = arith.constant 0 : index
    %312 = vector.load %arg3[%c0_54, %c0_55] : memref<224x384xbf16, #tpu.memory_space<vmem>>, vector<224x384xbf16>
    %313 = tpu.concatenate %311, %29 in 1 : vector<2x128xf32>, vector<2x32xf32> -> vector<2x160xf32>
    %314 = arith.truncf %313 : vector<2x160xf32> to vector<2x160xbf16>
    %315 = vector.extract_strided_slice %312 {offsets = [0, 0], sizes = [160, 64], strides = [1, 1]} : vector<224x384xbf16> to vector<160x64xbf16>
    %cst_56 = arith.constant dense<0.000000e+00> : vector<2x64xf32>
    %316 = tpu.matmul %314, %315, %cst_56 {dimension_numbers = #tpu.dot_dimension_numbers<[1], [0], [0], [1], [0, 0, 1, 1], [], []>} : vector<2x160xbf16>, vector<160x64xbf16>, vector<2x64xf32> -> vector<2x64xf32>
    %317 = vector.broadcast %2 : vector<1x64xf32> to vector<2x64xf32>
    %318 = arith.addf %316, %317 : vector<2x64xf32>
    %319 = tpu.iota {dimensions = array<i32: 1>} : vector<2x64xi32>
    %c32_i32 = arith.constant 32 : i32
    %320 = vector.broadcast %c32_i32 : i32 to vector<2x64xi32>
    %321 = arith.cmpi slt, %319, %320 : vector<2x64xi32>
    %322 = math.tanh %318 : vector<2x64xf32>
    %323 = arith.select %321, %322, %318 : vector<2x64xi1>, vector<2x64xf32>
    %324 = vector.extract_strided_slice %312 {offsets = [160, 0], sizes = [64, 384], strides = [1, 1]} : vector<224x384xbf16> to vector<64x384xbf16>
    %325 = arith.truncf %323 : vector<2x64xf32> to vector<2x64xbf16>
    %cst_57 = arith.constant dense<0.000000e+00> : vector<2x384xf32>
    %326 = tpu.matmul %325, %324, %cst_57 {dimension_numbers = #tpu.dot_dimension_numbers<[1], [0], [0], [1], [0, 0, 1, 1], [], []>} : vector<2x64xbf16>, vector<64x384xbf16>, vector<2x384xf32> -> vector<2x384xf32>
    %327 = vector.broadcast %3 : vector<1x384xf32> to vector<2x384xf32>
    %328 = arith.addf %326, %327 : vector<2x384xf32>
    %329 = vector.broadcast %4 : vector<1x384xf32> to vector<2x384xf32>
    %330 = arith.mulf %328, %329 : vector<2x384xf32>
    %331 = vector.broadcast %5 : vector<1x384xf32> to vector<2x384xf32>
    %332 = arith.addf %330, %331 : vector<2x384xf32>
    %cst_58 = arith.constant 2.000000e+01 : f32
    %333 = vector.broadcast %cst_58 : f32 to vector<2x384xf32>
    %334 = arith.cmpf ogt, %332, %333 : vector<2x384xf32>
    %cst_59 = arith.constant 2.000000e+01 : f32
    %335 = vector.broadcast %cst_59 : f32 to vector<2x384xf32>
    %336 = arith.minimumf %332, %335 : vector<2x384xf32>
    %337 = math.exp %336 : vector<2x384xf32>
    %338 = math.log1p %337 : vector<2x384xf32>
    %339 = arith.select %334, %332, %338 : vector<2x384xi1>, vector<2x384xf32>
    %340 = vector.extract_strided_slice %339 {offsets = [0, 0], sizes = [2, 128], strides = [1, 1]} : vector<2x384xf32> to vector<2x128xf32>
    %341 = vector.extract_strided_slice %339 {offsets = [0, 128], sizes = [2, 128], strides = [1, 1]} : vector<2x384xf32> to vector<2x128xf32>
    %342 = arith.addf %340, %341 : vector<2x128xf32>
    %343 = vector.extract_strided_slice %339 {offsets = [0, 256], sizes = [2, 128], strides = [1, 1]} : vector<2x384xf32> to vector<2x128xf32>
    %344 = arith.addf %342, %343 : vector<2x128xf32>
    %cst_60 = arith.constant 0.333333343 : f32
    %345 = vector.broadcast %cst_60 : f32 to vector<2x128xf32>
    %346 = arith.mulf %344, %345 : vector<2x128xf32>
    %347 = tpu.concatenate %339, %346 in 1 : vector<2x384xf32>, vector<2x128xf32> -> vector<2x512xf32>
    %c0_61 = arith.constant 0 : index
    %c0_62 = arith.constant 0 : index
    %348 = vector.load %arg5[%c0_61, %c0_62] : memref<2x512xf32, #tpu.memory_space<vmem>>, vector<2x512xf32>
    tpu.vector_store %arg5[%c0_61, %c0_62], %347 {strides = array<i32>} : memref<2x512xf32, #tpu.memory_space<vmem>>, vector<2x512xf32>,
    return
  }
}

</mosaic_0001>

<bundles_post_ra>
// kernel: self_mm_forward.1
= control target key start
LH: loop header
LB: loop body
LE: loop exit
PB: predicated region body
PF: predicated region fallthrough
CT: control target
= control target key end

     0   :  { %10 = vsyncpa [#allocation3], 0  ;;  %s3053_s0 = inlined_call_operand.vmem [shape: f32[3,2,8], index: 0, kind: input, shape index: {}]   ;;  %s3054_s1 = inlined_call_operand.vmem [shape: bf16[16,32], index: 1, kind: input, shape index: {}]   ;;  %s3055_s2 = inlined_call_operand.hbm [shape: bf16[160,512], index: 2, kind: input, shape index: {}]   ;;  %s3056_s3 = inlined_call_operand.hbm [shape: bf16[224,384], index: 3, kind: input, shape index: {}]   ;;  %s3057_s4 = inlined_call_operand.vmem [shape: f32[8,512], index: 4, kind: input, shape index: {}]   ;;  %s3058_s5 = inlined_call_operand.vmem [shape: f32[2,512], index: 5, kind: output, shape index: {}]  }
   0x1   :  { %11 = vsyncpa [#allocation5], 0  ;;  %s2381_s18 = smov [#allocation2]   ;;  %s2333_s22 = scalar_lea.hbm %s3055_s2, 5120 }
   0x2   :  { %s21_s19 = sshll.u32 %s2381_s18, 4  ;;  %p2334_p0 = scmp.ne.s32.totalorder %s3055_s2, %s2333_s22  ;;  %s22_s19 = int_to_ptr.vmem [resolvable:$true] %s21_s19 }
   0x3   :  { %p2337_p1 = scmp.lt.u32.totalorder %s2333_s22, %s3055_s2 }
   0x5   :  { %p2339_p2 = pnand %p2337_p1, %p2334_p0 }
   0x7   :  { %2342 = shalt.err (!%p2339_p2)
}
   0x8   :  { %s2343_s27 = scalar_lea.vmem %s22_s19, 5120  ;;  %p2348_p4 = scmp.lt.s32.totalorder %s22_s19, %s22_s19 }
   0x9   :  { %p2344_p3 = scmp.ne.s32.totalorder %s22_s19, %s2343_s27  ;;  %p2349_p5 = scmp.lt.s32.totalorder %s2343_s27, %s2343_s27 }
   0xb   :  { %p2350_p6 = por %p2349_p5, %p2348_p4 }
   0xd   :  { %p2351_p7 = pnand %p2350_p6, %p2344_p3 }
   0xf   :  { %2354 = shalt.err (!%p2351_p7)
}
  0x10   :  { %s2382_s28 = smov 256   ;;  %s2383_s29 = smov 16  }
  0x11   :  { %27 = dma.hbm_to_vmem [thread:$0]  %s3055_s2, 5120, %s22_s19, [#allocation3], %s2382_s28, %s2382_s28, %s2383_s29  }
  0x12   :  { %s2384_s7 = smov [#allocation4]   ;;  %s2355_s11 = scalar_lea.hbm %s3056_s3, 5376 }
  0x13   :  { %s33_s8 = sshll.u32 %s2384_s7, 4  ;;  %p2356_p8 = scmp.ne.s32.totalorder %s3056_s3, %s2355_s11  ;;  %s34_s8 = int_to_ptr.vmem [resolvable:$true] %s33_s8 }
  0x14   :  { %p2359_p9 = scmp.lt.u32.totalorder %s2355_s11, %s3056_s3 }
  0x16   :  { %p2361_p10 = pnand %p2359_p9, %p2356_p8 }
  0x18   :  { %2364 = shalt.err (!%p2361_p10)
}
  0x19   :  { %s2365_s16 = scalar_lea.vmem %s34_s8, 5376  ;;  %p2370_p12 = scmp.lt.s32.totalorder %s34_s8, %s34_s8 }
  0x1a   :  { %p2366_p11 = scmp.ne.s32.totalorder %s34_s8, %s2365_s16  ;;  %p2371_p13 = scmp.lt.s32.totalorder %s2365_s16, %s2365_s16 }
  0x1c   :  { %p2372_p0 = por %p2371_p13, %p2370_p12 }
  0x1e   :  { %p2373_p1 = pnand %p2372_p0, %p2366_p11 }
  0x20   :  { %2376 = shalt.err (!%p2373_p1)
}
  0x21   :  { %s2385_s2 = smov 192   ;;  %s2386_s17 = smov 12  }
  0x22   :  { %39 = dma.hbm_to_vmem [thread:$0]  %s3056_s3, 5376, %s34_s8, [#allocation5], %s2385_s2, %s2385_s2, %s2386_s17  }
  0x23   :  { %2377 = dma.done.wait [#allocation3], 5120  }
  0x24   :  { %2378 = vsyncadd [#allocation3], 4294962176 }
  0x25   :  { %2379 = dma.done.wait [#allocation5], 5376  }
  0x26   :  { %2380 = vsyncadd [#allocation5], 4294961920  ;;  %v3059_v0 = vmov 0   ;;  %v2065_v1 = vld [vmem:[#allocation2 + $0x4] ss:$16 sps:$4 sm:$0xff]   ;;  %vm91_vm0 = vcmask 261120   ;;  %v57_v44 = vlaneseq }
  0x27   :  { %257 = vmatprep.mubr.bf16.mxu0 %v3059_v0  ;;  %300 = vmatprep.mubr.bf16.mxu1 %v3059_v0  ;;  %v2067_v2 = vld [vmem:[#allocation2 + $0xc] ss:$16 sps:$4 sm:$0xff]   ;;  %v2069_v3 = vld [vmem:[#allocation2] ss:$16 sps:$4 sm:$0xff]   ;;  %v2070_v4 = vld [vmem:[#allocation2 + $0x8] ss:$16 sps:$4 sm:$0xff]  }
  0x28   :  { %2063 = vset.pattern.permute.xlu0 %v3059_v0  ;;  %225 = vmatprep.subr.bf16.mxu0 %v2065_v1  ;;  %v2071_v5 = vld [vmem:[#allocation2 + $0x24] ss:$16 sps:$4 sm:$0xff]   ;;  %v2073_v6 = vld [vmem:[#allocation2 + $0x2c] ss:$16 sps:$4 sm:$0xff]   ;;  %v2075_v7 = vld [vmem:[#allocation2 + $0x20] ss:$16 sps:$4 sm:$0xff]  }
  0x29   :  { %268 = vmatprep.subr.bf16.mxu1 %v2067_v2  ;;  %226 = vmatpush1.bf16.msra.mxu0 %v2069_v3  ;;  %v2076_v8 = vld [vmem:[#allocation2 + $0x28] ss:$16 sps:$4 sm:$0xff]   ;;  %v2077_v9 = vld [vmem:[%s3054_s1] sm:$0xff]   ;;  %v2454_v11 = vld [vmem:[#allocation2 + $0x4c] ss:$16 sps:$4 sm:$0xff]   ;;  %v2388_v43 = vmov 1  }
  0x2a   :  { %269 = vmatpush1.bf16.msra.mxu1 %v2070_v4  ;;  %227 = vmatprep.subr.bf16.mxu0 %v2071_v5  ;;  %v2452_v10 = vld [vmem:[#allocation2 + $0x44] ss:$16 sps:$4 sm:$0xff]   ;;  %v2456_v12 = vld [vmem:[#allocation2 + $0x40] ss:$16 sps:$4 sm:$0xff]   ;;  %v2458_v13 = vld [vmem:[#allocation2 + $0x48] ss:$16 sps:$4 sm:$0xff]  }
  0x2b   :  { %270 = vmatprep.subr.bf16.mxu1 %v2073_v6  ;;  %v2461_v14 = vld [vmem:[#allocation2 + $0x64] ss:$16 sps:$4 sm:$0xff]   ;;  %v2464_v15 = vld [vmem:[#allocation2 + $0x6c] ss:$16 sps:$4 sm:$0xff]   ;;  %v2468_v16 = vld [vmem:[#allocation2 + $0x60] ss:$16 sps:$4 sm:$0xff]  }
  0x2c   :  { %v2472_v17 = vld [vmem:[#allocation2 + $0x68] ss:$16 sps:$4 sm:$0xff]   ;;  %v2476_v18 = vld [vmem:[#allocation2 + $0x84] ss:$16 sps:$4 sm:$0xff]   ;;  %v2478_v19 = vld [vmem:[#allocation2 + $0x8c] ss:$16 sps:$4 sm:$0xff]  }
  0x2d   :  { %228 = vmatpush1.bf16.msra.mxu0 %v2075_v7  ;;  %v2484_v20 = vld [vmem:[#allocation2 + $0x80] ss:$16 sps:$4 sm:$0xff]   ;;  %v2486_v21 = vld [vmem:[#allocation2 + $0x88] ss:$16 sps:$4 sm:$0xff]   ;;  %v2488_v22 = vld [vmem:[#allocation2 + $0xa4] ss:$16 sps:$4 sm:$0xff]  }
  0x2e   :  { %271 = vmatpush1.bf16.msra.mxu1 %v2076_v8  ;;  %482 = vmatprep.subr.bf16.mxu0 %v2452_v10  ;;  %v2492_v23 = vld [vmem:[#allocation2 + $0xac] ss:$16 sps:$4 sm:$0xff]   ;;  %v2494_v24 = vld [vmem:[#allocation2 + $0xa0] ss:$16 sps:$4 sm:$0xff]   ;;  %v2498_v25 = vld [vmem:[#allocation2 + $0xa8] ss:$16 sps:$4 sm:$0xff]  }
  0x2f   :  { %523 = vmatprep.subr.bf16.mxu1 %v2454_v11  ;;  %v2502_v26 = vld [vmem:[#allocation2 + $0xc4] ss:$16 sps:$4 sm:$0xff]   ;;  %v2504_v27 = vld [vmem:[#allocation2 + $0xcc] ss:$16 sps:$4 sm:$0xff]   ;;  %v2508_v28 = vld [vmem:[#allocation2 + $0xc0] ss:$16 sps:$4 sm:$0xff]  }
  0x30   :  { %1944 = vmatmul.mubr.msk.bf16.vlgmr.msra.gmra.mrb[0].mxu0 %vm91_vm0, %v2077_v9  ;;  %v2510_v29 = vld [vmem:[#allocation2 + $0xc8] ss:$16 sps:$4 sm:$0xff]   ;;  %v2512_v30 = vld [vmem:[#allocation2 + $0xe4] ss:$16 sps:$4 sm:$0xff]   ;;  %v2516_v31 = vld [vmem:[#allocation2 + $0xec] ss:$16 sps:$4 sm:$0xff]  }
  0x31   :  { %1945 = vmatmul.mubr.msk.bf16.vlgmr.msra.gmra.mrb[0].mxu1 %vm91_vm0, %v2077_v9  ;;  %483 = vmatpush1.bf16.msra.mxu0 %v2456_v12  ;;  %v2518_v32 = vld [vmem:[#allocation2 + $0xe0] ss:$16 sps:$4 sm:$0xff]   ;;  %v2520_v33 = vld [vmem:[#allocation2 + $0xe8] ss:$16 sps:$4 sm:$0xff]   ;;  %v2522_v34 = vld [vmem:[#allocation2 + $0x104] ss:$16 sps:$4 sm:$0xff]  }
  0x32   :  { %524 = vmatpush1.bf16.msra.mxu1 %v2458_v13  ;;  %484 = vmatprep.subr.bf16.mxu0 %v2461_v14  ;;  %v55_v35 = vld [vmem:[%s3053_s0 + $0x4] sm:$0x3]  ;;  %v2529_v36 = vld [vmem:[#allocation2 + $0x10c] ss:$16 sps:$4 sm:$0xff]   ;;  %v2533_v37 = vld [vmem:[#allocation2 + $0x100] ss:$16 sps:$4 sm:$0xff]  }
  0x33   :  { %525 = vmatprep.subr.bf16.mxu1 %v2464_v15  ;;  %514 = vmatprep.mubr.bf16.mxu0 %v3059_v0  ;;  %v2535_v38 = vld [vmem:[#allocation2 + $0x108] ss:$16 sps:$4 sm:$0xff]   ;;  %v2537_v39 = vld [vmem:[#allocation2 + $0x124] ss:$16 sps:$4 sm:$0xff]   ;;  %v2539_v40 = vld [vmem:[#allocation2 + $0x12c] ss:$16 sps:$4 sm:$0xff]  }
  0x34   :  { %555 = vmatprep.mubr.bf16.mxu1 %v3059_v0  ;;  %314 = vperm.xlu0 %2063, %v55_v35   ;;  %v2545_v41 = vld [vmem:[#allocation2 + $0x120] ss:$16 sps:$4 sm:$0xff]   ;;  %v2547_v42 = vld [vmem:[#allocation2 + $0x128] ss:$16 sps:$4 sm:$0xff]   ;;  %v2593_v45 = vshrl.u32 %v57_v44, 7  ;;  %vm106_vm9 = vcmask 58368  }
  0x35   :  { %485 = vmatpush1.bf16.msra.mxu0 %v2468_v16  ;;  %v49_v47 = vld [vmem:[%s3057_s4] sm:$0xff]  ;;  %v51_v48 = vld [vmem:[%s3057_s4 + $0x10] sm:$0xff]  ;;  %v52_v49 = vld [vmem:[%s3057_s4 + $0x18] sm:$0xff]  ;;  %vm1554_vm13 = vcmask 1041409  }
  0x36   :  { %526 = vmatpush1.bf16.msra.mxu1 %v2472_v17  ;;  %486 = vmatprep.subr.bf16.mxu0 %v2476_v18  ;;  %v2596_v46 = vsub.s32 0, %v2593_v45  ;;  %v50_v51 = vld [vmem:[%s3057_s4 + $0x8] sm:$0xff] }
  0x37   :  { %527 = vmatprep.subr.bf16.mxu1 %v2478_v19 }
  0x38   :  { %2064 = vset.pattern.permute.xlu0 %v2388_v43  ;;  %v164_v50 = vrot.slane %v49_v47, %v2596_v46  ;;  %v172_v52 = vrot.slane %v51_v48, %v2596_v46  ;;  %v176_v55 = vrot.slane %v52_v49, %v2596_v46  ;;  %v168_v58 = vrot.slane %v50_v51, %v2596_v46 }
  0x39   :  { %487 = vmatpush1.bf16.msra.mxu0 %v2484_v20  ;;  %318 = vperm.xlu0 %2064, %v55_v35  }
  0x3a   :  { %528 = vmatpush1.bf16.msra.mxu1 %v2486_v21  ;;  %488 = vmatprep.subr.bf16.mxu0 %v2488_v22 }
  0x3b   :  { %529 = vmatprep.subr.bf16.mxu1 %v2492_v23 }
  0x3d   :  { %489 = vmatpush1.bf16.msra.mxu0 %v2494_v24 }
  0x3e   :  { %530 = vmatpush1.bf16.msra.mxu1 %v2498_v25  ;;  %490 = vmatprep.subr.bf16.mxu0 %v2502_v26 }
  0x3f   :  { %531 = vmatprep.subr.bf16.mxu1 %v2504_v27 }
  0x41   :  { %491 = vmatpush1.bf16.msra.mxu0 %v2508_v28 }
  0x42   :  { %532 = vmatpush1.bf16.msra.mxu1 %v2510_v29  ;;  %492 = vmatprep.subr.bf16.mxu0 %v2512_v30 }
  0x43   :  { %533 = vmatprep.subr.bf16.mxu1 %v2516_v31 }
  0x45   :  { %493 = vmatpush1.bf16.msra.mxu0 %v2518_v32 }
  0x46   :  { %534 = vmatpush1.bf16.msra.mxu1 %v2520_v33  ;;  %494 = vmatprep.subr.bf16.mxu0 %v2522_v34 }
  0x47   :  { %535 = vmatprep.subr.bf16.mxu1 %v2529_v36 }
  0x49   :  { %495 = vmatpush1.bf16.msra.mxu0 %v2533_v37 }
  0x4a   :  { %536 = vmatpush1.bf16.msra.mxu1 %v2535_v38  ;;  %496 = vmatprep.subr.bf16.mxu0 %v2537_v39 }
  0x4b   :  { %537 = vmatprep.subr.bf16.mxu1 %v2539_v40 }
  0x4d   :  { %497 = vmatpush1.bf16.msra.mxu0 %v2545_v41 }
  0x4e   :  { %538 = vmatpush1.bf16.msra.mxu1 %v2547_v42  ;;  %596 = vmatprep.subr.bf16.mxu0 %v2452_v10 }
  0x4f   :  { %637 = vmatprep.subr.bf16.mxu1 %v2454_v11 }
  0x50   :  { %515 = vmatmul.mubr.bf16.vlgmr.msra.gmra.mrb[4].mxu0 %v3059_v0 }
  0x51   :  { %556 = vmatmul.mubr.bf16.vlgmr.msra.gmra.mrb[4].mxu1 %v3059_v0  ;;  %597 = vmatpush1.bf16.msra.mxu0 %v2456_v12 }
  0x52   :  { %638 = vmatpush1.bf16.msra.mxu1 %v2458_v13  ;;  %598 = vmatprep.subr.bf16.mxu0 %v2461_v14 }
  0x53   :  { %639 = vmatprep.subr.bf16.mxu1 %v2464_v15  ;;  %628 = vmatprep.mubr.bf16.mxu0 %v3059_v0 }
  0x54   :  { %669 = vmatprep.mubr.bf16.mxu1 %v3059_v0 }
  0x55   :  { %599 = vmatpush1.bf16.msra.mxu0 %v2468_v16 }
  0x56   :  { %640 = vmatpush1.bf16.msra.mxu1 %v2472_v17  ;;  %600 = vmatprep.subr.bf16.mxu0 %v2476_v18 }
  0x57   :  { %641 = vmatprep.subr.bf16.mxu1 %v2478_v19 }
  0x59   :  { %601 = vmatpush1.bf16.msra.mxu0 %v2484_v20 }
  0x5a   :  { %642 = vmatpush1.bf16.msra.mxu1 %v2486_v21  ;;  %602 = vmatprep.subr.bf16.mxu0 %v2488_v22 }
  0x5b   :  { %643 = vmatprep.subr.bf16.mxu1 %v2492_v23 }
  0x5d   :  { %603 = vmatpush1.bf16.msra.mxu0 %v2494_v24 }
  0x5e   :  { %644 = vmatpush1.bf16.msra.mxu1 %v2498_v25  ;;  %604 = vmatprep.subr.bf16.mxu0 %v2502_v26 }
  0x5f   :  { %645 = vmatprep.subr.bf16.mxu1 %v2504_v27 }
  0x61   :  { %605 = vmatpush1.bf16.msra.mxu0 %v2508_v28 }
  0x62   :  { %646 = vmatpush1.bf16.msra.mxu1 %v2510_v29  ;;  %606 = vmatprep.subr.bf16.mxu0 %v2512_v30 }
  0x63   :  { %647 = vmatprep.subr.bf16.mxu1 %v2516_v31 }
  0x65   :  { %607 = vmatpush1.bf16.msra.mxu0 %v2518_v32 }
  0x66   :  { %648 = vmatpush1.bf16.msra.mxu1 %v2520_v33  ;;  %608 = vmatprep.subr.bf16.mxu0 %v2522_v34 }
  0x67   :  { %649 = vmatprep.subr.bf16.mxu1 %v2529_v36 }
  0x69   :  { %609 = vmatpush1.bf16.msra.mxu0 %v2533_v37 }
  0x6a   :  { %650 = vmatpush1.bf16.msra.mxu1 %v2535_v38  ;;  %610 = vmatprep.subr.bf16.mxu0 %v2537_v39 }
  0x6b   :  { %651 = vmatprep.subr.bf16.mxu1 %v2539_v40 }
  0x6d   :  { %611 = vmatpush1.bf16.msra.mxu0 %v2545_v41 }
  0x6e   :  { %652 = vmatpush1.bf16.msra.mxu1 %v2547_v42  ;;  %731 = vmatprep.subr.bf16.mxu0 %v2452_v10 }
  0x6f   :  { %772 = vmatprep.subr.bf16.mxu1 %v2454_v11 }
 0x103   :  { %v259_v53 = vpop.f32.mrb[0].mxu0 }
 0x104   :  { %v302_v54 = vpop.f32.mrb[0].mxu1  ;;  %v261_v56 = vpop.f32.mrb[1].mxu0  ;;  %v2622_v4 = vadd.f32 %v259_v53, %v164_v50 }
 0x105   :  { %v304_v57 = vpop.f32.mrb[1].mxu1  ;;  %v263_v59 = vpop.f32.mrb[2].mxu0  ;;  %v2624_v5 = vadd.f32 %v261_v56, %v168_v58  ;;  %v2631_v53 = vadd.f32 %v302_v54, %v172_v52 }
 0x106   :  { %v306_v60 = vpop.f32.mrb[2].mxu1  ;;  %v2614_v61 = vadd.f32 %v263_v59, %v164_v50  ;;  %v265_v62 = vpop.f32.mrb[3].mxu0 }
 0x107   :  { %v2616_v63 = vadd.f32 %v306_v60, %v172_v52  ;;  %v308_v1 = vpop.f32.mrb[3].mxu1  ;;  %v2618_v2 = vadd.f32 %v265_v62, %v168_v58  ;;  %v2628_v62 = vadd.f32 %v304_v57, %v176_v55  ;;  %v315_v54 = vpop.permute.xlu0 %314 }
 0x108   :  { %v2620_v3 = vadd.f32 %v308_v1, %v176_v55 }
 0x123   :  { %v516_v6 = vpop.f32.mrb[4].mxu0 }
 0x124   :  { %v557_v7 = vpop.f32.mrb[4].mxu1  ;;  %v564_v8 = vadd.f32 %v516_v6, %v2622_v4  ;;  %v518_v9 = vpop.f32.mrb[5].mxu0 }
 0x125   :  { %v559_v35 = vpop.f32.mrb[5].mxu1  ;;  %v565_v43 = vadd.f32 %v518_v9, %v2624_v5  ;;  %v520_v47 = vpop.f32.mrb[6].mxu0  ;;  %v566_v58 = vadd.f32 %v557_v7, %v2631_v53  ;;  %v2637_v7 = vand.u32 127, %v57_v44 }
 0x126   :  { %v561_v48 = vpop.f32.mrb[6].mxu1  ;;  %v1978_v49 = vmul.f32 -1.442695, %v564_v8  ;;  %v521_v51 = vpop.f32.mrb[7].mxu0  ;;  %v567_v50 = vadd.f32 %v559_v35, %v2628_v62 }
 0x127   :  { %v562_v59 = vpop.f32.mrb[7].mxu1  ;;  %v1979_v60 = vmul.f32 -1.442695, %v565_v43  ;;  %3063 = vst [vmem:[#allocation8_spill] sm:$0xff] %v2637_v7  ;;  %vm311_vm1 = vcmp.lt.s32.totalorder %v2637_v7, 64  ;;  %v319_v51 = vpop.permute.xlu0 %318 }
 0x128   :  { %2152 = vpow2.f32 %v1978_v49  ;;  %v1980_v56 = vmul.f32 -1.442695, %v567_v50  ;;  %v2640_v50 = vsel %vm311_vm1, %v315_v54, %v319_v51  ;;  %vm2390_vm1 = vmmov 0  }
 0x129   :  { %2154 = vpow2.f32 %v1979_v60  ;;  %vm592_vm2 = vcmp.gt.f32.partialorder %v2640_v50, 0.0  ;;  %vm721_vm4 = vcmp.gt.f32.partialorder %v2640_v50, 1.0  ;;  %vm856_vm5 = vcmp.gt.f32.partialorder %v2640_v50, 2.0 }
 0x12a   :  { %2156 = vpow2.f32 %v1980_v56  ;;  %vm1981_vm3 = vmpackc.low %vm592_vm2, %vm592_vm2  ;;  %vm991_vm6 = vcmp.gt.f32.partialorder %v2640_v50, 3.0  ;;  %vm1111_vm7 = vcmp.gt.f32.partialorder %v2640_v50, 4.0  ;;  %vm1240_vm8 = vcmp.gt.f32.partialorder %v2640_v50, 5.0 }
 0x12b   :  { %2158 = vtanh.f32 %v566_v58  ;;  %vm1375_vm10 = vcmp.gt.f32.partialorder %v2640_v50, 6.0  ;;  %vm1510_vm14 = vcmp.gt.f32.partialorder %v2640_v50, 7.0  ;;  %v2389_v50 = vmov 0.0  }
 0x132   :  { %v2153_v1 = vpop.eup %2152 }
 0x133   :  { %v2155_v6 = vpop.eup %2154  ;;  %v571_v9 = vadd.f32 1.0, %v2153_v1 }
 0x134   :  { %v577_v8 = vadd.f32 1.0, %v2155_v6  ;;  %v2157_v43 = vpop.eup %2156 }
 0x135   :  { %2160 = vrcp.f32 %v571_v9  ;;  %v2159_v47 = vpop.eup %2158  ;;  %v584_v49 = vadd.f32 1.0, %v2157_v43 }
 0x136   :  { %2162 = vrcp.f32 %v577_v8 }
 0x137   :  { %2164 = vrcp.f32 %v584_v49 }
 0x13f   :  { %v2161_v55 = vpop.eup %2160 }
 0x140   :  { %v2163_v57 = vpop.eup %2162  ;;  %v588_v48 = vmul.f32 %v2161_v55, %v2159_v47 }
 0x141   :  { %v587_v35 = vmul.f32 0.0, %v2163_v57  ;;  %v2165_v59 = vpop.eup %2164 }
 0x143   :  { %v2634_v52 = vadd.f32 %v588_v48, %v587_v35 }
 0x145   :  { %2166 = vtanh.f32 %v2634_v52 }
 0x14f   :  { %v2167_v60 = vpop.eup %2166 }
 0x150   :  { %v2642_v56 = vmul.f32 %v2167_v60, %v2165_v59 }
 0x152   :  { %v1982_v58 = vpack.c.bf16 %v2642_v56, %v2642_v56 }
 0x154   :  { %1983 = vmatmul.mubr.msk.bf16.vlgmr.msra.gmra.mrb[8].mxu0 %vm1981_vm3, %v1982_v58  ;;  %1986 = vmatmul.mubr.msk.bf16.vlgmr.msra.gmra.mrb[8].mxu1 %vm1981_vm3, %v1982_v58 }
 0x155   :  { %732 = vmatpush1.bf16.msra.mxu0 %v2456_v12  ;;  %773 = vmatpush1.bf16.msra.mxu1 %v2458_v13 }
 0x156   :  { %733 = vmatprep.subr.bf16.mxu0 %v2461_v14  ;;  %774 = vmatprep.subr.bf16.mxu1 %v2464_v15 }
 0x157   :  { %763 = vmatprep.mubr.bf16.mxu0 %v3059_v0  ;;  %804 = vmatprep.mubr.bf16.mxu1 %v3059_v0 }
 0x159   :  { %734 = vmatpush1.bf16.msra.mxu0 %v2468_v16  ;;  %775 = vmatpush1.bf16.msra.mxu1 %v2472_v17 }
 0x15a   :  { %735 = vmatprep.subr.bf16.mxu0 %v2476_v18  ;;  %776 = vmatprep.subr.bf16.mxu1 %v2478_v19 }
 0x15d   :  { %736 = vmatpush1.bf16.msra.mxu0 %v2484_v20  ;;  %777 = vmatpush1.bf16.msra.mxu1 %v2486_v21 }
 0x15e   :  { %737 = vmatprep.subr.bf16.mxu0 %v2488_v22  ;;  %778 = vmatprep.subr.bf16.mxu1 %v2492_v23 }
 0x161   :  { %738 = vmatpush1.bf16.msra.mxu0 %v2494_v24  ;;  %779 = vmatpush1.bf16.msra.mxu1 %v2498_v25 }
 0x162   :  { %739 = vmatprep.subr.bf16.mxu0 %v2502_v26  ;;  %780 = vmatprep.subr.bf16.mxu1 %v2504_v27 }
 0x165   :  { %740 = vmatpush1.bf16.msra.mxu0 %v2508_v28  ;;  %781 = vmatpush1.bf16.msra.mxu1 %v2510_v29 }
 0x166   :  { %741 = vmatprep.subr.bf16.mxu0 %v2512_v30  ;;  %782 = vmatprep.subr.bf16.mxu1 %v2516_v31 }
 0x169   :  { %742 = vmatpush1.bf16.msra.mxu0 %v2518_v32  ;;  %783 = vmatpush1.bf16.msra.mxu1 %v2520_v33 }
 0x16a   :  { %743 = vmatprep.subr.bf16.mxu0 %v2522_v34  ;;  %784 = vmatprep.subr.bf16.mxu1 %v2529_v36 }
 0x16d   :  { %744 = vmatpush1.bf16.msra.mxu0 %v2533_v37  ;;  %785 = vmatpush1.bf16.msra.mxu1 %v2535_v38 }
 0x16e   :  { %745 = vmatprep.subr.bf16.mxu0 %v2537_v39  ;;  %786 = vmatprep.subr.bf16.mxu1 %v2539_v40 }
 0x171   :  { %746 = vmatpush1.bf16.msra.mxu0 %v2545_v41  ;;  %787 = vmatpush1.bf16.msra.mxu1 %v2547_v42 }
 0x172   :  { %866 = vmatprep.subr.bf16.mxu0 %v2452_v10  ;;  %907 = vmatprep.subr.bf16.mxu1 %v2454_v11 }
 0x227   :  { %v630_v44 = vpop.f32.mrb[8].mxu0  ;;  %v671_v1 = vpop.f32.mrb[8].mxu1 }
 0x228   :  { %v682_v6 = vrot.slane %v630_v44, 6  ;;  %v632_v9 = vpop.f32.mrb[9].mxu0  ;;  %v673_v8 = vpop.f32.mrb[9].mxu1  ;;  %v684_v58 = vrot.slane %v671_v1, 6 }
 0x229   :  { %v683_v43 = vrot.slane %v632_v9, 6  ;;  %v634_v47 = vpop.f32.mrb[10].mxu0  ;;  %v675_v55 = vpop.f32.mrb[10].mxu1  ;;  %v685_v59 = vrot.slane %v673_v8, 6  ;;  %v594_v8 = vsel %vm592_vm2, %v2634_v52, 0.0 }
 0x22a   :  { %v690_v57 = vadd.f32 %v682_v6, %v2622_v4  ;;  %v635_v48 = vpop.f32.mrb[11].mxu0  ;;  %v676_v49 = vpop.f32.mrb[11].mxu1  ;;  %v692_v0 = vadd.f32 %v684_v58, %v2631_v53 }
 0x22b   :  { %v691_v35 = vadd.f32 %v683_v43, %v2624_v5  ;;  %v693_v60 = vadd.f32 %v685_v59, %v2628_v62  ;;  %v714_v49 = vrot.slane %v594_v8, 6 }
 0x22c   :  { %v1987_v54 = vmul.f32 -1.442695, %v690_v57 }
 0x22d   :  { %v1988_v51 = vmul.f32 -1.442695, %v691_v35  ;;  %v1989_v44 = vmul.f32 -1.442695, %v693_v60 }
 0x22e   :  { %2168 = vpow2.f32 %v1987_v54 }
 0x22f   :  { %2170 = vpow2.f32 %v1988_v51 }
 0x230   :  { %2172 = vpow2.f32 %v1989_v44 }
 0x231   :  { %2174 = vtanh.f32 %v692_v0 }
 0x238   :  { %v2169_v9 = vpop.eup %2168 }
 0x239   :  { %v2171_v47 = vpop.eup %2170  ;;  %v697_v55 = vadd.f32 1.0, %v2169_v9 }
 0x23a   :  { %v703_v6 = vadd.f32 1.0, %v2171_v47  ;;  %v2173_v43 = vpop.eup %2172  ;;  %v593_v47 = vsel %vm592_vm2, %v2642_v56, 0.0 }
 0x23b   :  { %2176 = vrcp.f32 %v697_v55  ;;  %v2175_v57 = vpop.eup %2174  ;;  %v710_v54 = vadd.f32 1.0, %v2173_v43 }
 0x23c   :  { %2178 = vrcp.f32 %v703_v6 }
 0x23d   :  { %2180 = vrcp.f32 %v710_v54 }
 0x245   :  { %v2177_v48 = vpop.eup %2176 }
 0x246   :  { %v2179_v1 = vpop.eup %2178  ;;  %v717_v35 = vmul.f32 %v2177_v48, %v2175_v57 }
 0x247   :  { %v716_v51 = vmul.f32 %v2179_v1, %v714_v49  ;;  %v2181_v58 = vpop.eup %2180 }
 0x249   :  { %v718_v59 = vadd.f32 %v717_v35, %v716_v51 }
 0x24b   :  { %2182 = vtanh.f32 %v718_v59  ;;  %v727_v60 = vrot.slane %v718_v59, 2 }
 0x24d   :  { %v2692_v0 = vsel %vm721_vm4, %v727_v60, %v594_v8  ;;  %v3064_v8 = vmov 0  }
 0x255   :  { %v2183_v44 = vpop.eup %2182 }
 0x256   :  { %v720_v9 = vmul.f32 %v2183_v44, %v2181_v58 }
 0x258   :  { %v723_v52 = vrot.slane %v720_v9, 2 }
 0x25a   :  { %v2697_v55 = vsel %vm721_vm4, %v723_v52, %v593_v47 }
 0x25b   :  { %v730_v6 = vpack.c.bf16 %v2697_v55, %v2697_v55 }
 0x25d   :  { %764 = vmatmul.mubr.bf16.vlgmr.msra.gmra.mrb[12].mxu0 %v730_v6  ;;  %805 = vmatmul.mubr.bf16.vlgmr.msra.gmra.mrb[12].mxu1 %v730_v6 }
 0x25e   :  { %867 = vmatpush1.bf16.msra.mxu0 %v2456_v12  ;;  %908 = vmatpush1.bf16.msra.mxu1 %v2458_v13 }
 0x25f   :  { %868 = vmatprep.subr.bf16.mxu0 %v2461_v14  ;;  %909 = vmatprep.subr.bf16.mxu1 %v2464_v15 }
 0x260   :  { %898 = vmatprep.mubr.bf16.mxu0 %v3064_v8  ;;  %939 = vmatprep.mubr.bf16.mxu1 %v3064_v8 }
 0x262   :  { %869 = vmatpush1.bf16.msra.mxu0 %v2468_v16  ;;  %910 = vmatpush1.bf16.msra.mxu1 %v2472_v17 }
 0x263   :  { %870 = vmatprep.subr.bf16.mxu0 %v2476_v18  ;;  %911 = vmatprep.subr.bf16.mxu1 %v2478_v19 }
 0x266   :  { %871 = vmatpush1.bf16.msra.mxu0 %v2484_v20  ;;  %912 = vmatpush1.bf16.msra.mxu1 %v2486_v21 }
 0x267   :  { %872 = vmatprep.subr.bf16.mxu0 %v2488_v22  ;;  %913 = vmatprep.subr.bf16.mxu1 %v2492_v23 }
 0x26a   :  { %873 = vmatpush1.bf16.msra.mxu0 %v2494_v24  ;;  %914 = vmatpush1.bf16.msra.mxu1 %v2498_v25 }
 0x26b   :  { %874 = vmatprep.subr.bf16.mxu0 %v2502_v26  ;;  %915 = vmatprep.subr.bf16.mxu1 %v2504_v27 }
 0x26e   :  { %875 = vmatpush1.bf16.msra.mxu0 %v2508_v28  ;;  %916 = vmatpush1.bf16.msra.mxu1 %v2510_v29 }
 0x26f   :  { %876 = vmatprep.subr.bf16.mxu0 %v2512_v30  ;;  %917 = vmatprep.subr.bf16.mxu1 %v2516_v31 }
 0x272   :  { %877 = vmatpush1.bf16.msra.mxu0 %v2518_v32  ;;  %918 = vmatpush1.bf16.msra.mxu1 %v2520_v33 }
 0x273   :  { %878 = vmatprep.subr.bf16.mxu0 %v2522_v34  ;;  %919 = vmatprep.subr.bf16.mxu1 %v2529_v36 }
 0x276   :  { %879 = vmatpush1.bf16.msra.mxu0 %v2533_v37  ;;  %920 = vmatpush1.bf16.msra.mxu1 %v2535_v38 }
 0x277   :  { %880 = vmatprep.subr.bf16.mxu0 %v2537_v39  ;;  %921 = vmatprep.subr.bf16.mxu1 %v2539_v40 }
 0x27a   :  { %881 = vmatpush1.bf16.msra.mxu0 %v2545_v41  ;;  %922 = vmatpush1.bf16.msra.mxu1 %v2547_v42 }
 0x27b   :  { %1001 = vmatprep.subr.bf16.mxu0 %v2452_v10  ;;  %1042 = vmatprep.subr.bf16.mxu1 %v2454_v11 }
 0x330   :  { %v765_v56 = vpop.f32.mrb[12].mxu0  ;;  %v806_v43 = vpop.f32.mrb[12].mxu1 }
 0x331   :  { %v817_v57 = vrot.slane %v765_v56, 4  ;;  %v767_v48 = vpop.f32.mrb[13].mxu0  ;;  %v808_v49 = vpop.f32.mrb[13].mxu1  ;;  %v819_v6 = vrot.slane %v806_v43, 4 }
 0x332   :  { %v818_v1 = vrot.slane %v767_v48, 4  ;;  %v769_v35 = vpop.f32.mrb[14].mxu0  ;;  %v810_v54 = vpop.f32.mrb[14].mxu1  ;;  %v820_v52 = vrot.slane %v808_v49, 4  ;;  %v849_v49 = vrot.slane %v2692_v0, 4 }
 0x333   :  { %v825_v51 = vadd.f32 %v817_v57, %v2622_v4  ;;  %v770_v59 = vpop.f32.mrb[15].mxu0  ;;  %v811_v60 = vpop.f32.mrb[15].mxu1  ;;  %v827_v7 = vadd.f32 %v819_v6, %v2631_v53 }
 0x334   :  { %v826_v58 = vadd.f32 %v818_v1, %v2624_v5  ;;  %v828_v47 = vadd.f32 %v820_v52, %v2628_v62 }
 0x335   :  { %v1990_v44 = vmul.f32 -1.442695, %v825_v51 }
 0x336   :  { %v1991_v9 = vmul.f32 -1.442695, %v826_v58  ;;  %v1992_v56 = vmul.f32 -1.442695, %v828_v47 }
 0x337   :  { %2184 = vpow2.f32 %v1990_v44 }
 0x338   :  { %2186 = vpow2.f32 %v1991_v9 }
 0x339   :  { %2188 = vpow2.f32 %v1992_v56 }
 0x33a   :  { %2190 = vtanh.f32 %v827_v7 }
 0x341   :  { %v2185_v48 = vpop.eup %2184 }
 0x342   :  { %v2187_v35 = vpop.eup %2186  ;;  %v832_v54 = vadd.f32 1.0, %v2185_v48 }
 0x343   :  { %v838_v57 = vadd.f32 1.0, %v2187_v35  ;;  %v2189_v1 = vpop.eup %2188 }
 0x344   :  { %2192 = vrcp.f32 %v832_v54  ;;  %v2191_v51 = vpop.eup %2190  ;;  %v845_v44 = vadd.f32 1.0, %v2189_v1 }
 0x345   :  { %2194 = vrcp.f32 %v838_v57 }
 0x346   :  { %2196 = vrcp.f32 %v845_v44 }
 0x34e   :  { %v2193_v59 = vpop.eup %2192 }
 0x34f   :  { %v2195_v60 = vpop.eup %2194  ;;  %v852_v58 = vmul.f32 %v2193_v59, %v2191_v51 }
 0x350   :  { %v851_v43 = vmul.f32 %v2195_v60, %v849_v49  ;;  %v2197_v47 = vpop.eup %2196 }
 0x352   :  { %v853_v9 = vadd.f32 %v852_v58, %v851_v43 }
 0x354   :  { %2198 = vtanh.f32 %v853_v9  ;;  %v862_v52 = vrot.slane %v853_v9, 4 }
 0x356   :  { %v2742_v7 = vsel %vm856_vm5, %v862_v52, %v2692_v0 }
 0x35e   :  { %v2199_v6 = vpop.eup %2198 }
 0x35f   :  { %v855_v56 = vmul.f32 %v2199_v6, %v2197_v47 }
 0x361   :  { %v858_v48 = vrot.slane %v855_v56, 4 }
 0x363   :  { %v2745_v35 = vsel %vm856_vm5, %v858_v48, %v2697_v55 }
 0x364   :  { %v865_v54 = vpack.c.bf16 %v2745_v35, %v2745_v35 }
 0x366   :  { %899 = vmatmul.mubr.bf16.vlgmr.msra.gmra.mrb[16].mxu0 %v865_v54  ;;  %940 = vmatmul.mubr.bf16.vlgmr.msra.gmra.mrb[16].mxu1 %v865_v54 }
 0x367   :  { %1002 = vmatpush1.bf16.msra.mxu0 %v2456_v12  ;;  %1043 = vmatpush1.bf16.msra.mxu1 %v2458_v13 }
 0x368   :  { %1003 = vmatprep.subr.bf16.mxu0 %v2461_v14  ;;  %1044 = vmatprep.subr.bf16.mxu1 %v2464_v15 }
 0x369   :  { %1033 = vmatprep.mubr.bf16.mxu0 %v3064_v8  ;;  %1074 = vmatprep.mubr.bf16.mxu1 %v3064_v8 }
 0x36b   :  { %1004 = vmatpush1.bf16.msra.mxu0 %v2468_v16  ;;  %1045 = vmatpush1.bf16.msra.mxu1 %v2472_v17 }
 0x36c   :  { %1005 = vmatprep.subr.bf16.mxu0 %v2476_v18  ;;  %1046 = vmatprep.subr.bf16.mxu1 %v2478_v19 }
 0x36f   :  { %1006 = vmatpush1.bf16.msra.mxu0 %v2484_v20  ;;  %1047 = vmatpush1.bf16.msra.mxu1 %v2486_v21 }
 0x370   :  { %1007 = vmatprep.subr.bf16.mxu0 %v2488_v22  ;;  %1048 = vmatprep.subr.bf16.mxu1 %v2492_v23 }
 0x373   :  { %1008 = vmatpush1.bf16.msra.mxu0 %v2494_v24  ;;  %1049 = vmatpush1.bf16.msra.mxu1 %v2498_v25 }
 0x374   :  { %1009 = vmatprep.subr.bf16.mxu0 %v2502_v26  ;;  %1050 = vmatprep.subr.bf16.mxu1 %v2504_v27 }
 0x377   :  { %1010 = vmatpush1.bf16.msra.mxu0 %v2508_v28  ;;  %1051 = vmatpush1.bf16.msra.mxu1 %v2510_v29 }
 0x378   :  { %1011 = vmatprep.subr.bf16.mxu0 %v2512_v30  ;;  %1052 = vmatprep.subr.bf16.mxu1 %v2516_v31 }
 0x37b   :  { %1012 = vmatpush1.bf16.msra.mxu0 %v2518_v32  ;;  %1053 = vmatpush1.bf16.msra.mxu1 %v2520_v33 }
 0x37c   :  { %1013 = vmatprep.subr.bf16.mxu0 %v2522_v34  ;;  %1054 = vmatprep.subr.bf16.mxu1 %v2529_v36 }
 0x37f   :  { %1014 = vmatpush1.bf16.msra.mxu0 %v2533_v37  ;;  %1055 = vmatpush1.bf16.msra.mxu1 %v2535_v38 }
 0x380   :  { %1015 = vmatprep.subr.bf16.mxu0 %v2537_v39  ;;  %1056 = vmatprep.subr.bf16.mxu1 %v2539_v40 }
 0x383   :  { %1016 = vmatpush1.bf16.msra.mxu0 %v2545_v41  ;;  %1057 = vmatpush1.bf16.msra.mxu1 %v2547_v42 }
 0x384   :  { %1115 = vmatprep.subr.bf16.mxu0 %v2452_v10  ;;  %1156 = vmatprep.subr.bf16.mxu1 %v2454_v11 }
 0x439   :  { %v900_v0 = vpop.f32.mrb[16].mxu0  ;;  %v941_v55 = vpop.f32.mrb[16].mxu1 }
 0x43a   :  { %v952_v57 = vrot.slane %v900_v0, 2  ;;  %v902_v1 = vpop.f32.mrb[17].mxu0  ;;  %v943_v51 = vpop.f32.mrb[17].mxu1  ;;  %v954_v11 = vrot.slane %v941_v55, 2 }
 0x43b   :  { %v953_v59 = vrot.slane %v902_v1, 2  ;;  %v904_v49 = vpop.f32.mrb[18].mxu0  ;;  %v945_v60 = vpop.f32.mrb[18].mxu1  ;;  %v955_v6 = vrot.slane %v943_v51, 2  ;;  %v984_v51 = vrot.slane %v2742_v7, 2 }
 0x43c   :  { %v960_v58 = vadd.f32 %v952_v57, %v2622_v4  ;;  %v905_v44 = vpop.f32.mrb[19].mxu0  ;;  %v946_v43 = vpop.f32.mrb[19].mxu1  ;;  %v962_v48 = vadd.f32 %v954_v11, %v2631_v53 }
 0x43d   :  { %v961_v9 = vadd.f32 %v953_v59, %v2624_v5  ;;  %v963_v10 = vadd.f32 %v955_v6, %v2628_v62 }
 0x43e   :  { %v1993_v52 = vmul.f32 -1.442695, %v960_v58 }
 0x43f   :  { %v1994_v47 = vmul.f32 -1.442695, %v961_v9  ;;  %v1995_v56 = vmul.f32 -1.442695, %v963_v10 }
 0x440   :  { %2200 = vpow2.f32 %v1993_v52 }
 0x441   :  { %2202 = vpow2.f32 %v1994_v47 }
 0x442   :  { %2204 = vpow2.f32 %v1995_v56 }
 0x443   :  { %2206 = vtanh.f32 %v962_v48 }
 0x44a   :  { %v2201_v54 = vpop.eup %2200 }
 0x44b   :  { %v2203_v0 = vpop.eup %2202  ;;  %v967_v1 = vadd.f32 1.0, %v2201_v54 }
 0x44c   :  { %v973_v4 = vadd.f32 1.0, %v2203_v0  ;;  %v2205_v5 = vpop.eup %2204 }
 0x44d   :  { %2208 = vrcp.f32 %v967_v1  ;;  %v2207_v57 = vpop.eup %2206  ;;  %v980_v62 = vadd.f32 1.0, %v2205_v5  ;;  %v2849_v1 = vld [vmem:[#allocation2 + $0x40] ss:$16 sps:$4 sm:$0xff]   ;;  %v2855_v5 = vld [vmem:[#allocation2 + $0x64] ss:$16 sps:$4 sm:$0xff]  }
 0x44e   :  { %2210 = vrcp.f32 %v973_v4  ;;  %v2852_v4 = vld [vmem:[#allocation2 + $0x48] ss:$16 sps:$4 sm:$0xff]  }
 0x44f   :  { %2212 = vrcp.f32 %v980_v62  ;;  %v2875_v62 = vld [vmem:[#allocation2 + $0x80] ss:$16 sps:$4 sm:$0xff]  }
 0x457   :  { %v2209_v59 = vpop.eup %2208 }
 0x458   :  { %v2211_v49 = vpop.eup %2210  ;;  %v987_v60 = vmul.f32 %v2209_v59, %v2207_v57  ;;  %v2858_v57 = vld [vmem:[#allocation2 + $0x6c] ss:$16 sps:$4 sm:$0xff]   ;;  %v2863_v59 = vld [vmem:[#allocation2 + $0x60] ss:$16 sps:$4 sm:$0xff]  }
 0x459   :  { %v986_v55 = vmul.f32 %v2211_v49, %v984_v51  ;;  %v2213_v43 = vpop.eup %2212  ;;  %v2866_v51 = vld [vmem:[#allocation2 + $0x68] ss:$16 sps:$4 sm:$0xff]   ;;  %v2869_v49 = vld [vmem:[#allocation2 + $0x84] ss:$16 sps:$4 sm:$0xff]  }
 0x45b   :  { %v988_v58 = vadd.f32 %v987_v60, %v986_v55  ;;  %v2872_v60 = vld [vmem:[#allocation2 + $0x8c] ss:$16 sps:$4 sm:$0xff]   ;;  %v2878_v55 = vld [vmem:[#allocation2 + $0x88] ss:$16 sps:$4 sm:$0xff]  }
 0x45d   :  { %2214 = vtanh.f32 %v988_v58  ;;  %v997_v53 = vrot.slane %v988_v58, 6  ;;  %v2881_v58 = vld [vmem:[#allocation2 + $0xa4] ss:$16 sps:$4 sm:$0xff]  }
 0x45f   :  { %v2790_v44 = vsel %vm991_vm6, %v997_v53, %v2742_v7  ;;  %v2884_v53 = vld [vmem:[#allocation2 + $0xac] ss:$16 sps:$4 sm:$0xff]  }
 0x467   :  { %v2215_v9 = vpop.eup %2214 }
 0x468   :  { %v990_v52 = vmul.f32 %v2215_v9, %v2213_v43  ;;  %v2890_v43 = vld [vmem:[#allocation2 + $0xa8] ss:$16 sps:$4 sm:$0xff]   ;;  %v2893_v9 = vld [vmem:[#allocation2 + $0xc4] ss:$16 sps:$4 sm:$0xff]  }
 0x46a   :  { %v993_v47 = vrot.slane %v990_v52, 6  ;;  %v2896_v52 = vld [vmem:[#allocation2 + $0xcc] ss:$16 sps:$4 sm:$0xff]  }
 0x46c   :  { %v2793_v6 = vsel %vm991_vm6, %v993_v47, %v2745_v35  ;;  %v2899_v47 = vld [vmem:[#allocation2 + $0xc0] ss:$16 sps:$4 sm:$0xff]  }
 0x46d   :  { %v1000_v10 = vpack.c.bf16 %v2793_v6, %v2793_v6 }
 0x46f   :  { %1034 = vmatmul.mubr.bf16.vlgmr.msra.gmra.mrb[20].mxu0 %v1000_v10  ;;  %1075 = vmatmul.mubr.bf16.vlgmr.msra.gmra.mrb[20].mxu1 %v1000_v10  ;;  %v2905_v10 = vld [vmem:[#allocation2 + $0xe4] ss:$16 sps:$4 sm:$0xff]  }
 0x470   :  { %1116 = vmatpush1.bf16.msra.mxu0 %v2456_v12  ;;  %1157 = vmatpush1.bf16.msra.mxu1 %v2458_v13  ;;  %v2829_v12 = vld [vmem:[#allocation2 + $0x44] ss:$16 sps:$4 sm:$0xff]   ;;  %v2832_v13 = vld [vmem:[#allocation2 + $0x4c] ss:$16 sps:$4 sm:$0xff]  }
 0x471   :  { %1117 = vmatprep.subr.bf16.mxu0 %v2461_v14  ;;  %1158 = vmatprep.subr.bf16.mxu1 %v2464_v15 }
 0x472   :  { %1147 = vmatprep.mubr.bf16.mxu0 %v3064_v8  ;;  %1188 = vmatprep.mubr.bf16.mxu1 %v3064_v8 }
 0x474   :  { %1118 = vmatpush1.bf16.msra.mxu0 %v2468_v16  ;;  %1159 = vmatpush1.bf16.msra.mxu1 %v2472_v17 }
 0x475   :  { %1119 = vmatprep.subr.bf16.mxu0 %v2476_v18  ;;  %1160 = vmatprep.subr.bf16.mxu1 %v2478_v19 }
 0x478   :  { %1120 = vmatpush1.bf16.msra.mxu0 %v2484_v20  ;;  %1161 = vmatpush1.bf16.msra.mxu1 %v2486_v21 }
 0x479   :  { %1121 = vmatprep.subr.bf16.mxu0 %v2488_v22  ;;  %1162 = vmatprep.subr.bf16.mxu1 %v2492_v23 }
 0x47c   :  { %1122 = vmatpush1.bf16.msra.mxu0 %v2494_v24  ;;  %1163 = vmatpush1.bf16.msra.mxu1 %v2498_v25 }
 0x47d   :  { %1123 = vmatprep.subr.bf16.mxu0 %v2502_v26  ;;  %1164 = vmatprep.subr.bf16.mxu1 %v2504_v27 }
 0x480   :  { %1124 = vmatpush1.bf16.msra.mxu0 %v2508_v28  ;;  %1165 = vmatpush1.bf16.msra.mxu1 %v2510_v29 }
 0x481   :  { %1125 = vmatprep.subr.bf16.mxu0 %v2512_v30  ;;  %1166 = vmatprep.subr.bf16.mxu1 %v2516_v31 }
 0x484   :  { %1126 = vmatpush1.bf16.msra.mxu0 %v2518_v32  ;;  %1167 = vmatpush1.bf16.msra.mxu1 %v2520_v33 }
 0x485   :  { %1127 = vmatprep.subr.bf16.mxu0 %v2522_v34  ;;  %1168 = vmatprep.subr.bf16.mxu1 %v2529_v36 }
 0x488   :  { %1128 = vmatpush1.bf16.msra.mxu0 %v2533_v37  ;;  %1169 = vmatpush1.bf16.msra.mxu1 %v2535_v38 }
 0x489   :  { %1129 = vmatprep.subr.bf16.mxu0 %v2537_v39  ;;  %1170 = vmatprep.subr.bf16.mxu1 %v2539_v40 }
 0x48c   :  { %1130 = vmatpush1.bf16.msra.mxu0 %v2545_v41  ;;  %1171 = vmatpush1.bf16.msra.mxu1 %v2547_v42 }
 0x48d   :  { %1250 = vmatprep.subr.bf16.mxu0 %v2829_v12  ;;  %1291 = vmatprep.subr.bf16.mxu1 %v2832_v13 }
 0x542   :  { %v1035_v14 = vpop.f32.mrb[20].mxu0  ;;  %v1076_v15 = vpop.f32.mrb[20].mxu1 }
 0x543   :  { %v1083_v16 = vadd.f32 %v1035_v14, %v2614_v61  ;;  %v1037_v17 = vpop.f32.mrb[21].mxu0  ;;  %v1078_v18 = vpop.f32.mrb[21].mxu1  ;;  %v1085_v28 = vadd.f32 %v1076_v15, %v2616_v63  ;;  %v2908_v14 = vld [vmem:[#allocation2 + $0xec] ss:$16 sps:$4 sm:$0xff]   ;;  %v2911_v15 = vld [vmem:[#allocation2 + $0xe0] ss:$16 sps:$4 sm:$0xff]  }
 0x544   :  { %v1084_v19 = vadd.f32 %v1037_v17, %v2618_v2  ;;  %v1039_v20 = vpop.f32.mrb[22].mxu0  ;;  %v1080_v21 = vpop.f32.mrb[22].mxu1  ;;  %v1086_v26 = vadd.f32 %v1078_v18, %v2620_v3  ;;  %v2917_v17 = vld [vmem:[#allocation2 + $0x104] ss:$16 sps:$4 sm:$0xff]   ;;  %v2920_v18 = vld [vmem:[#allocation2 + $0x10c] ss:$16 sps:$4 sm:$0xff]  }
 0x545   :  { %v1996_v22 = vmul.f32 -1.442695, %v1083_v16  ;;  %v1040_v23 = vpop.f32.mrb[23].mxu0  ;;  %v1081_v24 = vpop.f32.mrb[23].mxu1  ;;  %v2914_v16 = vld [vmem:[#allocation2 + $0xe8] ss:$16 sps:$4 sm:$0xff]  }
 0x546   :  { %v1997_v25 = vmul.f32 -1.442695, %v1084_v19  ;;  %v1998_v27 = vmul.f32 -1.442695, %v1086_v26  ;;  %v2923_v19 = vld [vmem:[#allocation2 + $0x100] ss:$16 sps:$4 sm:$0xff]  }
 0x547   :  { %2216 = vpow2.f32 %v1996_v22  ;;  %v2926_v20 = vld [vmem:[#allocation2 + $0x108] ss:$16 sps:$4 sm:$0xff]   ;;  %v2929_v21 = vld [vmem:[#allocation2 + $0x124] ss:$16 sps:$4 sm:$0xff]   ;;  %v2932_v22 = vld [vmem:[#allocation2 + $0x12c] ss:$16 sps:$4 sm:$0xff]  }
 0x548   :  { %2218 = vpow2.f32 %v1997_v25 }
 0x549   :  { %2220 = vpow2.f32 %v1998_v27 }
 0x54a   :  { %2222 = vtanh.f32 %v1085_v28 }
 0x551   :  { %v2217_v29 = vpop.eup %2216 }
 0x552   :  { %v2219_v30 = vpop.eup %2218  ;;  %v1090_v31 = vadd.f32 1.0, %v2217_v29 }
 0x553   :  { %v1096_v32 = vadd.f32 1.0, %v2219_v30  ;;  %v2221_v33 = vpop.eup %2220 }
 0x554   :  { %2224 = vrcp.f32 %v1090_v31  ;;  %v2223_v34 = vpop.eup %2222  ;;  %v1103_v39 = vadd.f32 1.0, %v2221_v33 }
 0x555   :  { %2226 = vrcp.f32 %v1096_v32 }
 0x556   :  { %2228 = vrcp.f32 %v1103_v39 }
 0x55e   :  { %v2225_v36 = vpop.eup %2224 }
 0x55f   :  { %v2227_v37 = vpop.eup %2226  ;;  %v1107_v38 = vmul.f32 %v2225_v36, %v2223_v34 }
 0x560   :  { %v1106_v40 = vmul.f32 %v2227_v37, %v2790_v44  ;;  %v2229_v11 = vpop.eup %2228 }
 0x562   :  { %v1108_v7 = vadd.f32 %v1107_v38, %v1106_v40 }
 0x564   :  { %2230 = vtanh.f32 %v1108_v7  ;;  %v2842_v35 = vsel %vm1111_vm7, %v1108_v7, %v2790_v44  ;;  %v2887_v44 = vld [vmem:[#allocation2 + $0xa0] ss:$16 sps:$4 sm:$0xff]  }
 0x56e   :  { %v2231_v56 = vpop.eup %2230 }
 0x56f   :  { %v1110_v48 = vmul.f32 %v2231_v56, %v2229_v11 }
 0x571   :  { %v2845_v54 = vsel %vm1111_vm7, %v1110_v48, %v2793_v6  ;;  %v2902_v6 = vld [vmem:[#allocation2 + $0xc8] ss:$16 sps:$4 sm:$0xff]  }
 0x572   :  { %v1114_v0 = vpack.c.bf16 %v2845_v54, %v2845_v54 }
 0x574   :  { %1148 = vmatmul.mubr.bf16.vlgmr.msra.gmra.mrb[24].mxu0 %v1114_v0  ;;  %1189 = vmatmul.mubr.bf16.vlgmr.msra.gmra.mrb[24].mxu1 %v1114_v0 }
 0x575   :  { %1251 = vmatpush1.bf16.msra.mxu0 %v2849_v1  ;;  %1292 = vmatpush1.bf16.msra.mxu1 %v2852_v4 }
 0x576   :  { %1252 = vmatprep.subr.bf16.mxu0 %v2855_v5  ;;  %1293 = vmatprep.subr.bf16.mxu1 %v2858_v57 }
 0x577   :  { %1282 = vmatprep.mubr.bf16.mxu0 %v3064_v8  ;;  %1323 = vmatprep.mubr.bf16.mxu1 %v3064_v8 }
 0x579   :  { %1253 = vmatpush1.bf16.msra.mxu0 %v2863_v59  ;;  %1294 = vmatpush1.bf16.msra.mxu1 %v2866_v51 }
 0x57a   :  { %1254 = vmatprep.subr.bf16.mxu0 %v2869_v49  ;;  %1295 = vmatprep.subr.bf16.mxu1 %v2872_v60 }
 0x57d   :  { %1255 = vmatpush1.bf16.msra.mxu0 %v2875_v62  ;;  %1296 = vmatpush1.bf16.msra.mxu1 %v2878_v55 }
 0x57e   :  { %1256 = vmatprep.subr.bf16.mxu0 %v2881_v58  ;;  %1297 = vmatprep.subr.bf16.mxu1 %v2884_v53 }
 0x581   :  { %1257 = vmatpush1.bf16.msra.mxu0 %v2887_v44  ;;  %1298 = vmatpush1.bf16.msra.mxu1 %v2890_v43 }
 0x582   :  { %1258 = vmatprep.subr.bf16.mxu0 %v2893_v9  ;;  %1299 = vmatprep.subr.bf16.mxu1 %v2896_v52 }
 0x585   :  { %1259 = vmatpush1.bf16.msra.mxu0 %v2899_v47  ;;  %1300 = vmatpush1.bf16.msra.mxu1 %v2902_v6 }
 0x586   :  { %1260 = vmatprep.subr.bf16.mxu0 %v2905_v10  ;;  %1301 = vmatprep.subr.bf16.mxu1 %v2908_v14 }
 0x589   :  { %1261 = vmatpush1.bf16.msra.mxu0 %v2911_v15  ;;  %1302 = vmatpush1.bf16.msra.mxu1 %v2914_v16 }
 0x58a   :  { %1262 = vmatprep.subr.bf16.mxu0 %v2917_v17  ;;  %1303 = vmatprep.subr.bf16.mxu1 %v2920_v18 }
 0x58d   :  { %1263 = vmatpush1.bf16.msra.mxu0 %v2923_v19  ;;  %1304 = vmatpush1.bf16.msra.mxu1 %v2926_v20 }
 0x58e   :  { %1264 = vmatprep.subr.bf16.mxu0 %v2929_v21  ;;  %1305 = vmatprep.subr.bf16.mxu1 %v2932_v22 }
 0x591   :  { %1265 = vmatpush1.bf16.msra.mxu0 %v2545_v41  ;;  %1306 = vmatpush1.bf16.msra.mxu1 %v2547_v42 }
 0x592   :  { %1385 = vmatprep.subr.bf16.mxu0 %v2829_v12  ;;  %1426 = vmatprep.subr.bf16.mxu1 %v2832_v13 }
 0x647   :  { %v1149_v23 = vpop.f32.mrb[24].mxu0  ;;  %v1190_v24 = vpop.f32.mrb[24].mxu1 }
 0x648   :  { %v1201_v25 = vrot.slane %v1149_v23, 6  ;;  %v1151_v26 = vpop.f32.mrb[25].mxu0  ;;  %v1192_v27 = vpop.f32.mrb[25].mxu1  ;;  %v1203_v13 = vrot.slane %v1190_v24, 6  ;;  %v1233_v23 = vrot.slane %v2842_v35, 6 }
 0x649   :  { %v1202_v28 = vrot.slane %v1151_v26, 6  ;;  %v1153_v29 = vpop.f32.mrb[26].mxu0  ;;  %v1194_v30 = vpop.f32.mrb[26].mxu1  ;;  %v1204_v36 = vrot.slane %v1192_v27, 6 }
 0x64a   :  { %v1209_v31 = vadd.f32 %v1201_v25, %v2614_v61  ;;  %v1154_v32 = vpop.f32.mrb[27].mxu0  ;;  %v1195_v33 = vpop.f32.mrb[27].mxu1  ;;  %v1211_v38 = vadd.f32 %v1203_v13, %v2616_v63 }
 0x64b   :  { %v1210_v41 = vadd.f32 %v1202_v28, %v2618_v2  ;;  %v1212_v12 = vadd.f32 %v1204_v36, %v2620_v3 }
 0x64c   :  { %v1999_v34 = vmul.f32 -1.442695, %v1209_v31 }
 0x64d   :  { %v2000_v42 = vmul.f32 -1.442695, %v1210_v41  ;;  %v2001_v37 = vmul.f32 -1.442695, %v1212_v12 }
 0x64e   :  { %2232 = vpow2.f32 %v1999_v34 }
 0x64f   :  { %2234 = vpow2.f32 %v2000_v42 }
 0x650   :  { %2236 = vpow2.f32 %v2001_v37 }
 0x651   :  { %2238 = vtanh.f32 %v1211_v38 }
 0x658   :  { %v2233_v39 = vpop.eup %2232 }
 0x659   :  { %v2235_v40 = vpop.eup %2234  ;;  %v1216_v7 = vadd.f32 1.0, %v2233_v39 }
 0x65a   :  { %v1222_v11 = vadd.f32 1.0, %v2235_v40  ;;  %v2237_v56 = vpop.eup %2236 }
 0x65b   :  { %2240 = vrcp.f32 %v1216_v7  ;;  %v2239_v48 = vpop.eup %2238  ;;  %v1229_v27 = vadd.f32 1.0, %v2237_v56 }
 0x65c   :  { %2242 = vrcp.f32 %v1222_v11 }
 0x65d   :  { %2244 = vrcp.f32 %v1229_v27 }
 0x665   :  { %v2241_v0 = vpop.eup %2240 }
 0x666   :  { %v2243_v25 = vpop.eup %2242  ;;  %v1236_v26 = vmul.f32 %v2241_v0, %v2239_v48 }
 0x667   :  { %v1235_v24 = vmul.f32 %v2243_v25, %v1233_v23  ;;  %v2245_v31 = vpop.eup %2244 }
 0x669   :  { %v1237_v28 = vadd.f32 %v1236_v26, %v1235_v24 }
 0x66b   :  { %2246 = vtanh.f32 %v1237_v28  ;;  %v1246_v29 = vrot.slane %v1237_v28, 2 }
 0x66d   :  { %v2946_v30 = vsel %vm1240_vm8, %v1246_v29, %v2842_v35  ;;  %v2328_v35 = vld [vmem:[#allocation2 + $0x120] ss:$16 sps:$4 sm:$0xff]  }
 0x66e   :  { %v1368_v7 = vrot.slane %v2946_v30, 4 }
 0x675   :  { %v2247_v32 = vpop.eup %2246 }
 0x676   :  { %v1239_v33 = vmul.f32 %v2247_v32, %v2245_v31 }
 0x678   :  { %v1242_v41 = vrot.slane %v1239_v33, 2 }
 0x67a   :  { %v2949_v34 = vsel %vm1240_vm8, %v1242_v41, %v2845_v54  ;;  %v2329_v54 = vld [vmem:[#allocation2 + $0x128] ss:$16 sps:$4 sm:$0xff]   ;;  %v2126_v41 = vld [vmem:[#allocation4] ss:$12 sps:$4 sm:$0xff]  }
 0x67b   :  { %v1249_v42 = vpack.c.bf16 %v2949_v34, %v2949_v34 }
 0x67d   :  { %1283 = vmatmul.mubr.bf16.vlgmr.msra.gmra.mrb[28].mxu0 %v1249_v42  ;;  %1324 = vmatmul.mubr.bf16.vlgmr.msra.gmra.mrb[28].mxu1 %v1249_v42 }
 0x67e   :  { %1386 = vmatpush1.bf16.msra.mxu0 %v2849_v1  ;;  %1427 = vmatpush1.bf16.msra.mxu1 %v2852_v4  ;;  %v54_v1 = vld [vmem:[%s3053_s0 + $0x2] sm:$0x3]  ;;  %v2988_v4 = vsub.s32 1, %v2593_v45 }
 0x67f   :  { %1387 = vmatprep.subr.bf16.mxu0 %v2855_v5  ;;  %1428 = vmatprep.subr.bf16.mxu1 %v2858_v57  ;;  %v53_v5 = vld [vmem:[%s3053_s0] sm:$0x3]  ;;  %v107_v57 = vsel %vm106_vm9, %v54_v1, 0.0 }
 0x680   :  { %1417 = vmatprep.mubr.bf16.mxu0 %v3064_v8  ;;  %1458 = vmatprep.mubr.bf16.mxu1 %v3064_v8 }
 0x681   :  { %108 = vadd.xlane.f32.xlu1 %v107_v57 }
 0x682   :  { %1388 = vmatpush1.bf16.msra.mxu0 %v2863_v59  ;;  %1429 = vmatpush1.bf16.msra.mxu1 %v2866_v51  ;;  %v2050_v59 = vtrunc.f32 %v53_v5  ;;  %v85_v51 = vrot.slane %v54_v1, %v2988_v4  ;;  %v3065_v5 = vld [vmem:[#allocation8_spill] sm:$0xff] }
 0x683   :  { %1389 = vmatprep.subr.bf16.mxu0 %v2869_v49  ;;  %1430 = vmatprep.subr.bf16.mxu1 %v2872_v60  ;;  %vm1666_vm15 = vcmp.lt.s32.totalorder %v3065_v5, 32 }
 0x684   :  { %v2051_v49 = vcvt.f32.s32 %v2050_v59  ;;  %87 = vbcast.lane.b32.xlu0 %v85_v51, 256 }
 0x686   :  { %1390 = vmatpush1.bf16.msra.mxu0 %v2875_v62  ;;  %1431 = vmatpush1.bf16.msra.mxu1 %v2878_v55  ;;  %v62_v60 = vrot.slane %v2051_v49, %v2596_v46  ;;  %v78_v62 = vrot.slane %v54_v1, %v2596_v46  ;;  %v69_v55 = vrot.slane %v2051_v49, %v2988_v4  ;;  %v2128_v49 = vld [vmem:[#allocation4 + $0x30] ss:$12 sps:$4 sm:$0xff]  }
 0x687   :  { %1391 = vmatprep.subr.bf16.mxu0 %v2881_v58  ;;  %1432 = vmatprep.subr.bf16.mxu1 %v2884_v53 }
 0x688   :  { %64 = vbcast.lane.b32.xlu0 %v62_v60, 256 }
 0x68a   :  { %1392 = vmatpush1.bf16.msra.mxu0 %v2887_v44  ;;  %1433 = vmatpush1.bf16.msra.mxu1 %v2890_v43 }
 0x68b   :  { %1393 = vmatprep.subr.bf16.mxu0 %v2893_v9  ;;  %1434 = vmatprep.subr.bf16.mxu1 %v2896_v52 }
 0x68c   :  { %80 = vbcast.lane.b32.xlu0 %v78_v62, 256 }
 0x68e   :  { %1394 = vmatpush1.bf16.msra.mxu0 %v2899_v47  ;;  %1435 = vmatpush1.bf16.msra.mxu1 %v2902_v6 }
 0x68f   :  { %1395 = vmatprep.subr.bf16.mxu0 %v2905_v10  ;;  %1436 = vmatprep.subr.bf16.mxu1 %v2908_v14 }
 0x692   :  { %1396 = vmatpush1.bf16.msra.mxu0 %v2911_v15  ;;  %1437 = vmatpush1.bf16.msra.mxu1 %v2914_v16 }
 0x693   :  { %1397 = vmatprep.subr.bf16.mxu0 %v2917_v17  ;;  %1438 = vmatprep.subr.bf16.mxu1 %v2920_v18 }
 0x694   :  { %71 = vbcast.lane.b32.xlu1 %v69_v55, 256 }
 0x696   :  { %1398 = vmatpush1.bf16.msra.mxu0 %v2923_v19  ;;  %1439 = vmatpush1.bf16.msra.mxu1 %v2926_v20 }
 0x697   :  { %1399 = vmatprep.subr.bf16.mxu0 %v2929_v21  ;;  %1440 = vmatprep.subr.bf16.mxu1 %v2932_v22 }
 0x69a   :  { %1400 = vmatpush1.bf16.msra.mxu0 %v2328_v35  ;;  %1441 = vmatpush1.bf16.msra.mxu1 %v2329_v54  ;;  %v2127_v35 = vld [vmem:[#allocation4 + $0x18] ss:$12 sps:$4 sm:$0xff]  }
 0x69b   :  { %1626 = vmatprep.subr.bf16.mxu0 %v3064_v8 }
 0x6f6   :  { %v88_v33 = vpop.permute.xlu0 %87 }
 0x70e   :  { %v109_v42 = vpop.xlane.xlu1 %108 }
 0x70f   :  { %v110_v1 = vmax.f32 %v109_v42, 1.0 }
 0x711   :  { %v112_v57 = vrot.slane %v110_v1, 1 }
 0x712   :  { %v72_v54 = vpop.permute.xlu1 %71 }
 0x713   :  { %vm74_vm11 = vcmp.eq.s32.totalorder %v72_v54, %v3065_v5 }
 0x750   :  { %v1284_v58 = vpop.f32.mrb[28].mxu0  ;;  %v1325_v53 = vpop.f32.mrb[28].mxu1 }
 0x751   :  { %v1336_v44 = vrot.slane %v1284_v58, 4  ;;  %v1286_v43 = vpop.f32.mrb[29].mxu0  ;;  %v1327_v9 = vpop.f32.mrb[29].mxu1  ;;  %v1338_v20 = vrot.slane %v1325_v53, 4 }
 0x752   :  { %v1337_v52 = vrot.slane %v1286_v43, 4  ;;  %v1288_v47 = vpop.f32.mrb[30].mxu0  ;;  %v1329_v6 = vpop.f32.mrb[30].mxu1  ;;  %v1339_v18 = vrot.slane %v1327_v9, 4 }
 0x753   :  { %v1344_v10 = vadd.f32 %v1336_v44, %v2614_v61  ;;  %v1289_v14 = vpop.f32.mrb[31].mxu0  ;;  %v1330_v15 = vpop.f32.mrb[31].mxu1  ;;  %v1346_v22 = vadd.f32 %v1338_v20, %v2616_v63  ;;  %v2129_v44 = vld [vmem:[#allocation4 + $0x48] ss:$12 sps:$4 sm:$0xff]   ;;  %v2130_v6 = vld [vmem:[#allocation4 + $0x60] ss:$12 sps:$4 sm:$0xff]  }
 0x754   :  { %v1345_v16 = vadd.f32 %v1337_v52, %v2618_v2  ;;  %v1347_v19 = vadd.f32 %v1339_v18, %v2620_v3 }
 0x755   :  { %v2002_v17 = vmul.f32 -1.442695, %v1344_v10 }
 0x756   :  { %v2003_v46 = vmul.f32 -1.442695, %v1345_v16  ;;  %v2004_v21 = vmul.f32 -1.442695, %v1347_v19 }
 0x757   :  { %2248 = vpow2.f32 %v2002_v17 }
 0x758   :  { %2250 = vpow2.f32 %v2003_v46  ;;  %v2131_v46 = vld [vmem:[#allocation4 + $0x78] ss:$12 sps:$4 sm:$0xff]  }
 0x759   :  { %2252 = vpow2.f32 %v2004_v21  ;;  %v2132_v21 = vld [vmem:[#allocation4 + $0x90] ss:$12 sps:$4 sm:$0xff]  }
 0x75a   :  { %2254 = vtanh.f32 %v1346_v22 }
 0x761   :  { %v2249_v36 = vpop.eup %2248 }
 0x762   :  { %v2251_v12 = vpop.eup %2250  ;;  %v1351_v13 = vadd.f32 1.0, %v2249_v36 }
 0x763   :  { %v1357_v37 = vadd.f32 1.0, %v2251_v12  ;;  %v2253_v38 = vpop.eup %2252 }
 0x764   :  { %2256 = vrcp.f32 %v1351_v13  ;;  %v2255_v39 = vpop.eup %2254  ;;  %v1364_v48 = vadd.f32 1.0, %v2253_v38  ;;  %v2134_v38 = vld [vmem:[#allocation4 + $0xc0] ss:$12 sps:$4 sm:$0xff]  }
 0x765   :  { %2258 = vrcp.f32 %v1357_v37  ;;  %v2133_v37 = vld [vmem:[#allocation4 + $0xa8] ss:$12 sps:$4 sm:$0xff]  }
 0x766   :  { %2260 = vrcp.f32 %v1364_v48 }
 0x76e   :  { %v2257_v40 = vpop.eup %2256 }
 0x76f   :  { %v2259_v11 = vpop.eup %2258  ;;  %v1371_v56 = vmul.f32 %v2257_v40, %v2255_v39  ;;  %v2135_v39 = vld [vmem:[#allocation4 + $0xd8] ss:$12 sps:$4 sm:$0xff]  }
 0x770   :  { %v1370_v0 = vmul.f32 %v2259_v11, %v1368_v7  ;;  %v2261_v27 = vpop.eup %2260 }
 0x772   :  { %v1372_v23 = vadd.f32 %v1371_v56, %v1370_v0 }
 0x774   :  { %2262 = vtanh.f32 %v1372_v23  ;;  %v1381_v25 = vrot.slane %v1372_v23, 4 }
 0x775   :  { %2264 = vrcp.f32 %v112_v57 }
 0x776   :  { %v3004_v26 = vsel %vm1375_vm10, %v1381_v25, %v2946_v30  ;;  %v65_v30 = vpop.permute.xlu0 %64  ;;  %2266 = vrcp.f32 %v110_v1 }
 0x777   :  { %vm73_vm12 = vcmp.eq.s32.totalorder %v65_v30, %v3065_v5  ;;  %v1672_v5 = vsub.s32 2, %v2593_v45 }
 0x77a   :  { %v81_v51 = vpop.permute.xlu0 %80 }
 0x77b   :  { %v89_v62 = vsel %vm73_vm12, %v81_v51, 0.0  ;;  %v1503_v51 = vrot.slane %v3004_v26, 2  ;;  %v2141_v26 = vld [vmem:[#allocation4 + $0x10c] ss:$12 sps:$4 sm:$0xff]  }
 0x77c   :  { %v92_v55 = vsel %vm91_vm0, %v89_v62, 0.0 }
 0x77d   :  { %v93_v53 = vrot.slane %v92_v55, 4 }
 0x77e   :  { %v2263_v24 = vpop.eup %2262 }
 0x77f   :  { %v1374_v28 = vmul.f32 %v2263_v24, %v2261_v27  ;;  %v94_v9 = vadd.f32 %v93_v53, %v92_v55  ;;  %v2265_v17 = vpop.eup %2264 }
 0x780   :  { %v2267_v20 = vpop.eup %2266 }
 0x781   :  { %v1377_v29 = vrot.slane %v1374_v28, 4  ;;  %v95_v47 = vrot.slane %v94_v9, 2 }
 0x783   :  { %v3007_v31 = vsel %vm1375_vm10, %v1377_v29, %v2949_v34  ;;  %v90_v34 = vsel %vm74_vm11, %v88_v33, 0.0  ;;  %v96_v14 = vadd.f32 %v95_v47, %v94_v9  ;;  %v2136_v47 = vld [vmem:[#allocation4 + $0xf0] ss:$12 sps:$4 sm:$0xff]  }
 0x784   :  { %v1384_v32 = vpack.c.bf16 %v3007_v31, %v3007_v31  ;;  %v99_v59 = vsel %vm91_vm0, %v90_v34, 0.0 }
 0x785   :  { %v100_v60 = vrot.slane %v99_v59, 4  ;;  %v97_v16 = vrot.slane %v96_v14, 1 }
 0x786   :  { %1418 = vmatmul.mubr.bf16.vlgmr.msra.gmra.mrb[32].mxu0 %v1384_v32  ;;  %1459 = vmatmul.mubr.bf16.vlgmr.msra.gmra.mrb[32].mxu1 %v1384_v32 }
 0x787   :  { %1782 = vmatprep.mubr.bf16.mxu1 %v3064_v8  ;;  %1627 = vmatpush1.bf16.msra.mxu0 %v2126_v41  ;;  %v101_v58 = vadd.f32 %v100_v60, %v99_v59  ;;  %v98_v19 = vadd.f32 %v97_v16, %v96_v14  ;;  %v2142_v14 = vld [vmem:[#allocation4 + $0x120] ss:$12 sps:$4 sm:$0xff]   ;;  %v2145_v16 = vld [vmem:[#allocation4 + $0x138] ss:$12 sps:$4 sm:$0xff]  }
 0x788   :  { %1628 = vmatprep.subr.bf16.mxu0 %v3064_v8 }
 0x789   :  { %v102_v43 = vrot.slane %v101_v58, 2  ;;  %v116_v36 = vmul.f32 %v2267_v20, %v98_v19 }
 0x78b   :  { %1629 = vmatpush1.bf16.msra.mxu0 %v2127_v35  ;;  %v103_v52 = vadd.f32 %v102_v43, %v101_v58 }
 0x78c   :  { %1630 = vmatprep.subr.bf16.mxu0 %v3064_v8 }
 0x78d   :  { %v104_v10 = vrot.slane %v103_v52, 1 }
 0x78f   :  { %1631 = vmatpush1.bf16.msra.mxu0 %v2128_v49  ;;  %v105_v15 = vadd.f32 %v104_v10, %v103_v52  ;;  %v2138_v52 = vld [vmem:[#allocation4 + $0xf4] ss:$12 sps:$4 sm:$0xff]   ;;  %v2144_v10 = vld [vmem:[#allocation4 + $0x124] ss:$12 sps:$4 sm:$0xff]  }
 0x790   :  { %1632 = vmatprep.subr.bf16.mxu0 %v3064_v8  ;;  %1750 = vmatprep.subr.bf16.mxu1 %v2138_v52 }
 0x791   :  { %v118_v18 = vmul.f32 %v2265_v17, %v105_v15  ;;  %1751 = vmatpush1.bf16.msra.mxu1 %v2136_v47  ;;  %v2147_v15 = vld [vmem:[#allocation4 + $0x13c] ss:$12 sps:$4 sm:$0xff]  }
 0x792   :  { %1752 = vmatprep.subr.bf16.mxu1 %v2141_v26 }
 0x793   :  { %1633 = vmatpush1.bf16.msra.mxu0 %v2129_v44  ;;  %v1553_v22 = vrot.slane %v118_v18, 7 }
 0x794   :  { %1634 = vmatprep.subr.bf16.mxu0 %v3064_v8 }
 0x795   :  { %v1555_v12 = vsel %vm1554_vm13, %v1553_v22, %v116_v36 }
 0x796   :  { %v1558_v13 = vpack.c.bf16 %v1555_v12, %v1555_v12  ;;  %v2148_v12 = vld [vmem:[#allocation4 + $0xf8] ss:$12 sps:$4 sm:$0xff]  }
 0x797   :  { %1635 = vmatpush1.bf16.msra.mxu0 %v2130_v6  ;;  %v2139_v6 = vld [vmem:[#allocation4 + $0x108] ss:$12 sps:$4 sm:$0xff]  }
 0x798   :  { %1636 = vmatprep.subr.bf16.mxu0 %v3064_v8  ;;  %2018 = vmatprep.mubr.msk.bf16.mxu0 %vm91_vm0, %v1558_v13  ;;  %vm1746_vm0 = vcmask 523264  }
 0x799   :  { %1753 = vmatpush1.bf16.msra.mxu1 %v2139_v6 }
 0x79a   :  { %1754 = vmatprep.subr.bf16.mxu1 %v2144_v10 }
 0x79b   :  { %1637 = vmatpush1.bf16.msra.mxu0 %v2131_v46 }
 0x79c   :  { %1638 = vmatprep.subr.bf16.mxu0 %v3064_v8 }
 0x79d   :  { %1755 = vmatpush1.bf16.msra.mxu1 %v2142_v14 }
 0x79e   :  { %1756 = vmatprep.subr.bf16.mxu1 %v2147_v15 }
 0x79f   :  { %1639 = vmatpush1.bf16.msra.mxu0 %v2132_v21 }
 0x7a0   :  { %1640 = vmatprep.subr.bf16.mxu0 %v3064_v8 }
 0x7a1   :  { %1757 = vmatpush1.bf16.msra.mxu1 %v2145_v16 }
 0x7a2   :  { %2038 = vmatprep.subr.bf16.mxu1 %v2389_v50 }
 0x7a3   :  { %1641 = vmatpush1.bf16.msra.mxu0 %v2133_v37  ;;  %v2149_v37 = vld [vmem:[#allocation4 + $0x110] ss:$12 sps:$4 sm:$0xff]  }
 0x7a4   :  { %1642 = vmatprep.subr.bf16.mxu0 %v3064_v8 }
 0x7a7   :  { %1643 = vmatpush1.bf16.msra.mxu0 %v2134_v38  ;;  %v2151_v38 = vld [vmem:[#allocation4 + $0x140] ss:$12 sps:$4 sm:$0xff]  }
 0x7a8   :  { %1644 = vmatprep.subr.bf16.mxu0 %v3064_v8 }
 0x7ab   :  { %1645 = vmatpush1.bf16.msra.mxu0 %v2135_v39  ;;  %v1833_v39 = vsub.s32 3, %v2593_v45 }
 0x859   :  { %v1419_v40 = vpop.f32.mrb[32].mxu0  ;;  %v1460_v7 = vpop.f32.mrb[32].mxu1 }
 0x85a   :  { %v1471_v11 = vrot.slane %v1419_v40, 2  ;;  %v1421_v56 = vpop.f32.mrb[33].mxu0  ;;  %v1462_v48 = vpop.f32.mrb[33].mxu1  ;;  %v1473_v42 = vrot.slane %v1460_v7, 2  ;;  %v1848_v7 = vsub.s32 4, %v2593_v45 }
 0x85b   :  { %v1472_v0 = vrot.slane %v1421_v56, 2  ;;  %v1423_v23 = vpop.f32.mrb[34].mxu0  ;;  %v1464_v25 = vpop.f32.mrb[34].mxu1  ;;  %v1474_v41 = vrot.slane %v1462_v48, 2 }
 0x85c   :  { %v1479_v27 = vadd.f32 %v1471_v11, %v2614_v61  ;;  %v1424_v24 = vpop.f32.mrb[35].mxu0  ;;  %v1465_v28 = vpop.f32.mrb[35].mxu1  ;;  %v1481_v35 = vadd.f32 %v1473_v42, %v2616_v63  ;;  %v2331_v11 = vld [vmem:[%s3057_s4 + $0x8] sm:$0xff] }
 0x85d   :  { %v1480_v29 = vadd.f32 %v1472_v0, %v2618_v2  ;;  %v1482_v8 = vadd.f32 %v1474_v41, %v2620_v3  ;;  %v1677_v56 = vrot.slane %v2331_v11, %v1672_v5  ;;  %v1838_v23 = vrot.slane %v2331_v11, %v1833_v39 }
 0x85e   :  { %v2005_v32 = vmul.f32 -1.442695, %v1479_v27 }
 0x85f   :  { %v2006_v33 = vmul.f32 -1.442695, %v1480_v29  ;;  %v2007_v30 = vmul.f32 -1.442695, %v1482_v8  ;;  %v1853_v29 = vrot.slane %v2331_v11, %v1848_v7 }
 0x860   :  { %2268 = vpow2.f32 %v2005_v32 }
 0x861   :  { %2270 = vpow2.f32 %v2006_v33 }
 0x862   :  { %2272 = vpow2.f32 %v2007_v30 }
 0x863   :  { %2274 = vtanh.f32 %v1481_v35 }
 0x86a   :  { %v2269_v54 = vpop.eup %2268 }
 0x86b   :  { %v2271_v1 = vpop.eup %2270  ;;  %v1486_v34 = vadd.f32 1.0, %v2269_v54 }
 0x86c   :  { %v1492_v61 = vadd.f32 1.0, %v2271_v1  ;;  %v2273_v2 = vpop.eup %2272 }
 0x86d   :  { %2276 = vrcp.f32 %v1486_v34  ;;  %v2275_v57 = vpop.eup %2274  ;;  %v1499_v3 = vadd.f32 1.0, %v2273_v2 }
 0x86e   :  { %2278 = vrcp.f32 %v1492_v61  ;;  %v2332_v61 = vld [vmem:[%s3057_s4 + $0x10] sm:$0xff] }
 0x86f   :  { %2280 = vrcp.f32 %v1499_v3  ;;  %v1681_v2 = vrot.slane %v2332_v61, %v1672_v5 }
 0x877   :  { %v2277_v59 = vpop.eup %2276 }
 0x878   :  { %v2279_v49 = vpop.eup %2278  ;;  %v1506_v60 = vmul.f32 %v2277_v59, %v2275_v57  ;;  %v1842_v57 = vrot.slane %v2332_v61, %v1833_v39 }
 0x879   :  { %v1505_v62 = vmul.f32 %v2279_v49, %v1503_v51  ;;  %v2281_v63 = vpop.eup %2280  ;;  %v1857_v49 = vrot.slane %v2332_v61, %v1848_v7 }
 0x87b   :  { %v1507_v55 = vadd.f32 %v1506_v60, %v1505_v62 }
 0x87d   :  { %2282 = vtanh.f32 %v1507_v55 }
 0x887   :  { %v2283_v58 = vpop.eup %2282 }
 0x888   :  { %v1509_v53 = vmul.f32 %v2283_v58, %v2281_v63 }
 0x88a   :  { %v1512_v44 = vrot.slane %v1509_v53, 6 }
 0x88c   :  { %v1514_v43 = vsel %vm1510_vm14, %v1512_v44, %v3007_v31  ;;  %v2330_v31 = vld [vmem:[%s3057_s4] sm:$0xff] }
 0x88d   :  { %v1557_v9 = vpack.c.bf16 %v1514_v43, %v1514_v43  ;;  %v1562_v17 = vrot.slane %v2330_v31, %v2988_v4  ;;  %v2150_v4 = vld [vmem:[#allocation4 + $0x128] ss:$12 sps:$4 sm:$0xff]   ;;  %v1673_v40 = vrot.slane %v2330_v31, %v1672_v5  ;;  %v1834_v48 = vrot.slane %v2330_v31, %v1833_v39 }
 0x88e   :  { %v1849_v27 = vrot.slane %v2330_v31, %v1848_v7  ;;  %v2391_v39 = vmov 1983009808  }
 0x88f   :  { %1659 = vmatmul.mubr.bf16.vlgmr.msra.gmra.mrb[36].mxu0 %v1557_v9 }
 0x962   :  { %v1660_v46 = vpop.f32.mrb[36].mxu0 }
 0x963   :  { %v1661_v18 = vadd.f32 %v1660_v46, %v1562_v17  ;;  %v1662_v19 = vpop.f32.mrb[37].mxu0 }
 0x964   :  { %v1663_v20 = vpop.f32.mrb[38].mxu0 }
 0x965   :  { %2284 = vtanh.f32 %v1661_v18  ;;  %v1664_v21 = vpop.f32.mrb[39].mxu0 }
 0x96f   :  { %v2285_v22 = vpop.eup %2284 }
 0x970   :  { %v1668_v36 = vsel %vm1666_vm15, %v2285_v22, %v1661_v18 }
 0x971   :  { %v1669_v13 = vpack.c.bf16 %v1668_v36, %v1668_v36 }
 0x973   :  { %2031 = vmatmul.mubr.msk.bf16.vlgmr.msra.gmra.mrb[36].mxu1 %vm1746_vm0, %v1669_v13 }
 0x974   :  { %2039 = vmatpush3.bf16.msra.mxu1 %v2148_v12  ;;  %2046 = vmatprep.mubr.msk.bf16.mxu1 %vm2390_vm1, %v2389_v50 }
 0x975   :  { %2040 = vmatprep.subr.bf16.mxu1 %v2389_v50 }
 0x978   :  { %2041 = vmatpush3.bf16.msra.mxu1 %v2149_v37 }
 0x979   :  { %2042 = vmatprep.subr.bf16.mxu1 %v2389_v50 }
 0x97c   :  { %2043 = vmatpush3.bf16.msra.mxu1 %v2150_v4 }
 0x97d   :  { %2044 = vmatprep.subr.bf16.mxu1 %v2389_v50 }
 0x980   :  { %2045 = vmatpush3.bf16.msra.mxu1 %v2151_v38 }
 0x983   :  { %2047 = vmatmul.mubr.msk.bf16.vlgmr.msra.gmra.mrb[40].mxu1 %vm1746_vm0, %v1669_v13 }
 0xa46   :  { %v1784_v0 = vpop.f32.mrb[36].mxu1 }
 0xa47   :  { %v1785_v25 = vadd.f32 %v1784_v0, %v1673_v40  ;;  %v1786_v24 = vpop.f32.mrb[37].mxu1  ;;  %v1913_v40 = vunpack.c.l.s4 %v2391_v39 }
 0xa48   :  { %v1787_v28 = vadd.f32 %v1786_v24, %v1677_v56  ;;  %v1788_v32 = vpop.f32.mrb[38].mxu1 }
 0xa49   :  { %v1843_v33 = vmul.f32 %v1834_v48, %v1785_v25  ;;  %v1789_v41 = vpop.f32.mrb[39].mxu1  ;;  %v1914_v48 = vunpack.c.0.s8 %v1913_v40 }
 0xa4a   :  { %v1844_v8 = vmul.f32 %v1838_v23, %v1787_v28 }
 0xa4b   :  { %v1858_v42 = vadd.f32 %v1849_v27, %v1843_v33  ;;  %v1917_v27 = vsub.s32 %v1914_v48, %v2593_v45 }
 0xa4c   :  { %v1859_v30 = vadd.f32 %v1853_v29, %v1844_v8 }
 0xa4d   :  { %v1864_v35 = vmin.f32 %v1858_v42, 20.0  ;;  %vm1861_vm3 = vcmp.gt.f32.partialorder %v1858_v42, 20.0 }
 0xa4e   :  { %v1865_v54 = vmin.f32 %v1859_v30, 20.0  ;;  %vm1862_vm5 = vcmp.gt.f32.partialorder %v1859_v30, 20.0 }
 0xa4f   :  { %v1867_v1 = vmul.f32 1.442695, %v1864_v35 }
 0xa50   :  { %v1869_v34 = vmul.f32 1.442695, %v1865_v54 }
 0xa51   :  { %2286 = vpow2.f32 %v1867_v1 }
 0xa52   :  { %2288 = vpow2.f32 %v1869_v34 }
 0xa56   :  { %v1825_v59 = vpop.f32.mrb[40].mxu1 }
 0xa57   :  { %v1826_v51 = vadd.f32 %v1825_v59, %v1681_v2  ;;  %v2048_v60 = vpop.f32.mrb[41].mxu1 }
 0xa58   :  { %v1828_v3 = vpop.f32.mrb[42].mxu1 }
 0xa59   :  { %v1845_v62 = vmul.f32 %v1842_v57, %v1826_v51  ;;  %v2049_v55 = vpop.f32.mrb[43].mxu1 }
 0xa5b   :  { %v2287_v63 = vpop.eup %2286  ;;  %v1860_v58 = vadd.f32 %v1857_v49, %v1845_v62 }
 0xa5c   :  { %v2289_v53 = vpop.eup %2288  ;;  %v1873_v44 = vadd.f32 1.0, %v2287_v63  ;;  %v1876_v47 = vmul.f32 -0.5, %v2287_v63  ;;  %v1879_v10 = vand.u32 2147483647, %v2287_v63 }
 0xa5d   :  { %v1882_v43 = vadd.f32 1.0, %v2289_v53  ;;  %v1866_v9 = vmin.f32 %v1860_v58, 20.0  ;;  %v1885_v26 = vmul.f32 -0.5, %v2289_v53  ;;  %v1888_v15 = vand.u32 2147483647, %v2289_v53 }
 0xa5e   :  { %2290 = vlog2.f32 %v1873_v44  ;;  %v1877_v6 = vadd.f32 1.0, %v1876_v47  ;;  %vm1880_vm2 = vcmp.lt.f32.partialorder %v1879_v10, 0.0004427343  ;;  %vm1863_vm7 = vcmp.gt.f32.partialorder %v1860_v58, 20.0 }
 0xa5f   :  { %2292 = vlog2.f32 %v1882_v43  ;;  %v1871_v52 = vmul.f32 1.442695, %v1866_v9  ;;  %v1886_v14 = vadd.f32 1.0, %v1885_v26  ;;  %vm1889_vm4 = vcmp.lt.f32.partialorder %v1888_v15, 0.0004427343 }
 0xa60   :  { %v1878_v17 = vmul.f32 %v2287_v63, %v1877_v6 }
 0xa61   :  { %2294 = vpow2.f32 %v1871_v52  ;;  %v1887_v18 = vmul.f32 %v2289_v53, %v1886_v14 }
 0xa68   :  { %v2291_v16 = vpop.eup %2290 }
 0xa69   :  { %v2293_v50 = vpop.eup %2292  ;;  %v1875_v31 = vmul.f32 0.6931472, %v2291_v16 }
 0xa6a   :  { %v1884_v46 = vmul.f32 0.6931472, %v2293_v50 }
 0xa6b   :  { %v1881_v19 = vsel %vm1880_vm2, %v1878_v17, %v1875_v31  ;;  %v2295_v20 = vpop.eup %2294 }
 0xa6c   :  { %v1900_v21 = vsel %vm1861_vm3, %v1858_v42, %v1881_v19  ;;  %v1890_v22 = vsel %vm1889_vm4, %v1887_v18, %v1884_v46  ;;  %v1891_v12 = vadd.f32 1.0, %v2295_v20  ;;  %v1894_v4 = vmul.f32 -0.5, %v2295_v20 }
 0xa6d   :  { %v1901_v36 = vsel %vm1862_vm5, %v1859_v30, %v1890_v22  ;;  %v1897_v5 = vand.u32 2147483647, %v2295_v20 }
 0xa6e   :  { %v1903_v13 = vadd.f32 %v1901_v36, %v1900_v21  ;;  %v1910_v37 = vcombine.low %v1900_v21, %v1901_v36  ;;  %2296 = vlog2.f32 %v1891_v12  ;;  %v1895_v38 = vadd.f32 1.0, %v1894_v4 }
 0xa6f   :  { %vm1898_vm6 = vcmp.lt.f32.partialorder %v1897_v5, 0.0004427343 }
 0xa70   :  { %v1896_v56 = vmul.f32 %v2295_v20, %v1895_v38  ;;  %v1918_v29 = vrot.slane %v1910_v37, %v1917_v27 }
 0xa78   :  { %v2297_v7 = vpop.eup %2296 }
 0xa79   :  { %v1893_v11 = vmul.f32 0.6931472, %v2297_v7 }
 0xa7b   :  { %v1899_v0 = vsel %vm1898_vm6, %v1896_v56, %v1893_v11 }
 0xa7c   :  { %v1902_v23 = vsel %vm1863_vm7, %v1860_v58, %v1899_v0 }
 0xa7d   :  { %v1904_v25 = vadd.f32 %v1903_v13, %v1902_v23 }
 0xa7f   :  { %v1905_v24 = vmul.f32 0.33333334, %v1904_v25 }
 0xa81   :  { %v1911_v28 = vcombine.low %v1902_v23, %v1905_v24 }
 0xa83   :  { %v1925_v32 = vrot.slane %v1911_v28, %v1917_v27 }
 0xa85   :  { %v1926_v33 = vcombine.low %v1918_v29, %v1925_v32 }
 0xa87   :  { %1928 = vst [vmem:[%s3058_s5] sm:$0xff] %v1926_v33 }
 0xa88   :  { %1933 = vsyncpa [#allocation3], 1 }
 0xa89   :  { %1934 = vsyncpa [#allocation5], 1 }

</bundles_post_ra>
